<compile_context>
chip_gen: v7x
topology: tpu7x:2x2x1
jax: 0.10.0
libtpu: 0.0.40
codegen_flags: <defaults>
</compile_context>

<pallas_src>
import functools

import jax
import jax.numpy as jnp
from jax import lax
from jax.experimental import pallas as pl
from jax.experimental.pallas import tpu as pltpu


def _round_up(x, m):
    return (x + m - 1) // m * m


def _largest_divisor_leq(n, cap):
    for b in range(min(cap, n), 0, -1):
        if n % b == 0:
            return b
    return 1


def _vmem_limit_bytes(headroom=16 << 20, floor=32 << 20, ceiling=112 << 20):
    # Generation-aware VMEM cap: physical capacity minus headroom for Mosaic's
    # own scratch/semaphores (v7x 64 MiB -> 48 MiB, v5e/v6e 128 MiB -> 112 MiB).
    try:
        cap = int(pltpu.get_tpu_info().vmem_capacity_bytes)
    except Exception:
        cap = 64 << 20
    return int(min(max(cap - headroom, floor), ceiling))


def _row_index_map(n, ob, *, hop, j):
    # H block size is 1, so the returned index is an element-granular row offset.
    return (n, ob * hop + j, 0, 0)


# -----------------------------------------------------------------------------
# Kernel 1: power iteration  ->  u_new, v_new, sigma, inv_sigma
# -----------------------------------------------------------------------------
def _power_iteration_kernel(w_ref, u_ref, u_out_ref, v_out_ref, sigma_ref,
                            inv_sigma_ref, *, power_iterations, eps):
    # w: (OC, K) = weight_bar.view(height, -1) in PyTorch (c, kh, kw) order.
    # u: (OC, 1) column vector.  All math in f32 on the VPU/XLU.
    w = w_ref[...].astype(jnp.float32)
    u = u_ref[...].astype(jnp.float32)
    v = jnp.zeros((1, w.shape[1]), jnp.float32)
    for _ in range(power_iterations):
        # v = l2normalize(w^T u): broadcast-mul + sublane reduction.
        v = jnp.sum(w * u, axis=0, keepdims=True)                       # (1, K)
        v = v / (jnp.sqrt(jnp.sum(v * v, keepdims=True)) + eps)
        # u = l2normalize(w v): broadcast-mul + lane reduction.
        wv = jnp.sum(w * v, axis=1, keepdims=True)                      # (OC, 1)
        u = wv / (jnp.sqrt(jnp.sum(wv * wv, keepdims=True)) + eps)
    wv = jnp.sum(w * v, axis=1, keepdims=True)                          # (OC, 1)
    sigma = jnp.sum(u * wv, keepdims=True)                              # (1, 1)
    u_out_ref[...] = u
    v_out_ref[...] = v
    sigma_ref[...] = sigma
    inv_sigma_ref[...] = pl.reciprocal(sigma)   # exact; folded into the weight


# -----------------------------------------------------------------------------
# Kernel 2 (built per-shape): fused window-gather conv2d(x, weight_bar/sigma, b)
# -----------------------------------------------------------------------------
def spectral_norm_conv2d_forward(x, weight_bar, bias, u, *, stride=1, padding=0,
                                 dilation=1, power_iterations=1, eps=1e-12,
                                 row_block=8, gemm_dtype=jnp.bfloat16,
                                 nchw_output=True):
    """SpectralNorm(nn.Conv2d).forward.

    x: (N, C, H, W); weight_bar: (OC, C, KH, KW); bias: (OC,); u: (OC,).
    Returns (y, u_new, v_new, sigma); u_new/v_new are the updated power-iteration
    buffers (PyTorch mutates them in place; here they are returned functionally).
    """
    assert power_iterations >= 1, "power_iterations must be >= 1 (sigma would be 0)"
    N, C, H, W = x.shape
    OC, IC, KH, KW = weight_bar.shape
    assert IC == C, (IC, C)
    K = C * KH * KW
    d = dilation

    # ---- power iteration (Pallas kernel) -------------------------------------
    w_mat = weight_bar.reshape(OC, K).astype(jnp.float32)   # PyTorch view order
    u_col = u.reshape(OC, 1).astype(jnp.float32)
    pi_kernel = functools.partial(_power_iteration_kernel,
                                  power_iterations=power_iterations, eps=eps)
    u_new, v_new, sigma, inv_sigma = pl.pallas_call(
        pi_kernel,
        out_shape=(jax.ShapeDtypeStruct((OC, 1), jnp.float32),
                   jax.ShapeDtypeStruct((1, K), jnp.float32),
                   jax.ShapeDtypeStruct((1, 1), jnp.float32),
                   jax.ShapeDtypeStruct((1, 1), jnp.float32)),
    )(w_mat, u_col)

    # ---- fused conv2d with the spectrally-normalized weight ------------------
    OH = (H + 2 * padding - d * (KH - 1) - 1) // stride + 1
    OW = (W + 2 * padding - d * (KW - 1) - 1) // stride + 1
    Hp, Wp = H + 2 * padding, W + 2 * padding

    # Lane-dense OC only when it is already large; small-OC hrnet layers keep
    # OCp == OC (full-dim block, masked vst beats 16x padded HBM writeback).
    OCp = OC if OC < 128 else _round_up(OC, 128)

    # Per-tap weight W[kh,kw] as (C, OC), scaled once by 1/sigma (no per-tile
    # epilogue multiply), padded on OC if needed, cast to the MXU operand dtype.
    w_taps = jnp.transpose(weight_bar, (2, 3, 1, 0)).reshape(KH * KW, C, OC)
    w_taps = w_taps.astype(jnp.float32) * inv_sigma[0, 0]
    if OCp != OC:
        w_taps = jnp.pad(w_taps, ((0, 0), (0, 0), (0, OCp - OC)))
    w_taps = w_taps.astype(gemm_dtype)
    b2 = bias.astype(jnp.float32)
    if OCp != OC:
        b2 = jnp.pad(b2, (0, OCp - OC))
    b2 = b2.reshape(1, OCp)

    # NHWC padded input stays in HBM; no im2col materialization.
    x_nhwc = jnp.transpose(x, (0, 2, 3, 1))
    if padding:
        x_nhwc = jnp.pad(x_nhwc,
                         ((0, 0), (padding, padding), (padding, padding), (0, 0)))

    # Band of `bh` output rows per grid step; bh divides OH exactly.  Halo rows
    # are simply re-fetched by the neighbouring band.
    bh = _largest_divisor_leq(OH, max(1, row_block))
    hop = bh * stride                                  # input-row hop per band
    n_rows = (bh - 1) * stride + (KH - 1) * d + 1      # input rows per band

    def conv_kernel(*refs):
        x_rows = refs[:n_rows]
        w_ref, b_ref, o_ref = refs[n_rows], refs[n_rows + 1], refs[n_rows + 2]
        # Load each input row once; cast to the MXU operand dtype in VMEM.
        rows = [x_rows[j][...].astype(gemm_dtype) for j in range(n_rows)]
        bvec = b_ref[...]                               # (1, OCp), f32
        accs = [jnp.zeros((OW, OCp), jnp.float32) for _ in range(bh)]
        # Tap-major order so a given (C, OCp) weight tap is reused across rows.
        for kh in range(KH):
            for kw in range(KW):
                w_tap = w_ref[kh * KW + kw]             # (C, OCp)
                for r in range(bh):
                    row = rows[r * stride + kh * d]     # (Wp, C)
                    if stride == 1:
                        xw = row[kw * d: kw * d + OW, :]
                    else:
                        xw = lax.slice(row, (kw * d, 0),
                                       (kw * d + stride * (OW - 1) + 1, C),
                                       (stride, 1))
                    accs[r] = accs[r] + jnp.dot(
                        xw, w_tap, preferred_element_type=jnp.float32)
        for r in range(bh):
            o_ref[r] = (accs[r] + bvec).astype(o_ref.dtype)

    # Single-row input BlockSpecs: H block size 1 => element-granular offsets.
    row_specs = [pl.BlockSpec((None, None, Wp, C),
                              functools.partial(_row_index_map, hop=hop, j=j))
                 for j in range(n_rows)]
    w_spec = pl.BlockSpec((KH * KW, C, OCp), lambda n, ob: (0, 0, 0))   # resident
    b_spec = pl.BlockSpec((1, OCp), lambda n, ob: (0, 0))               # resident
    out_spec = pl.BlockSpec((None, bh, OW, OCp), lambda n, ob: (n, ob, 0, 0))

    x_itm = jnp.dtype(x_nhwc.dtype).itemsize
    w_itm = jnp.dtype(gemm_dtype).itemsize
    o_itm = jnp.dtype(x.dtype).itemsize
    cost = pl.CostEstimate(
        flops=int(2 * N * OH * OW * K * OCp), transcendentals=0,
        bytes_accessed=int(N * (OH // bh) * n_rows * Wp * C * x_itm
                           + KH * KW * C * OCp * w_itm + OCp * 4
                           + N * OH * OW * OCp * o_itm))

    out = pl.pallas_call(
        conv_kernel,
        out_shape=jax.ShapeDtypeStruct((N, OH, OW, OCp), x.dtype),
        grid=(N, OH // bh),
        in_specs=row_specs + [w_spec, b_spec],
        out_specs=out_spec,
        compiler_params=pltpu.CompilerParams(
            dimension_semantics=("parallel", "parallel"),
            vmem_limit_bytes=_vmem_limit_bytes()),
        cost_estimate=cost,
    )(*([x_nhwc] * n_rows), w_taps, b2)

    y = out if OCp == OC else out[..., :OC]
    if nchw_output:                       # PyTorch semantics: NCHW output
        y = jnp.transpose(y, (0, 3, 1, 2))
    return y, u_new.reshape(OC), v_new.reshape(K), sigma.reshape(())


# -----------------------------------------------------------------------------
# Pure-JAX reference (mirrors SpectralNorm._update_u_v + nn.Conv2d.forward)
# -----------------------------------------------------------------------------
def _reference(x, weight_bar, bias, u, *, stride, padding, dilation,
               power_iterations, eps=1e-12):
    OC = weight_bar.shape[0]
    w_mat = weight_bar.reshape(OC, -1)
    uu = u
    vv = None
    for _ in range(power_iterations):
        vv = w_mat.T @ uu
        vv = vv / (jnp.linalg.norm(vv) + eps)
        uu = w_mat @ vv
        uu = uu / (jnp.linalg.norm(uu) + eps)
    sigma = uu @ (w_mat @ vv)
    w_sn = weight_bar / sigma
    y = jax.lax.conv_general_dilated(
        x, w_sn, window_strides=(stride, stride),
        padding=[(padding, padding), (padding, padding)],
        rhs_dilation=(dilation, dilation),
        dimension_numbers=("NCHW", "OIHW", "NCHW"))
    y = y + bias.reshape(1, -1, 1, 1)
    return y, uu, vv, sigma


if __name__ == "__main__":
    # Small shapes consistent with hrnet's SpectralNorm(nn.Conv2d(4, 8, 3, 1, 1)).
    N, C, H, W = 2, 4, 16, 16
    OC, KH, KW = 8, 3, 3
    stride, padding, dilation = 1, 1, 1
    power_iterations = 1

    key = jax.random.PRNGKey(0)
    kx, kw_, kb, ku = jax.random.split(key, 4)
    x = jax.random.normal(kx, (N, C, H, W), dtype=jnp.float32)
    fan_in = C * KH * KW
    bound = 1.0 / (fan_in ** 0.5)
    weight_bar = jax.random.uniform(kw_, (OC, C, KH, KW), jnp.float32, -bound, bound)
    bias = jax.random.uniform(kb, (OC,), jnp.float32, -bound, bound)
    u0 = jax.random.normal(ku, (OC,), jnp.float32)
    u0 = u0 / (jnp.linalg.norm(u0) + 1e-12)          # l2normalize, as _make_params

    y_ref, u_ref, v_ref, s_ref = _reference(
        x, weight_bar, bias, u0, stride=stride, padding=padding,
        dilation=dilation, power_iterations=power_iterations)

    # f32-operand path (tight tolerance).
    fwd_f32 = jax.jit(functools.partial(
        spectral_norm_conv2d_forward, stride=stride, padding=padding,
        dilation=dilation, power_iterations=power_iterations,
        row_block=8, gemm_dtype=jnp.float32))
    y, u_new, v_new, sigma = fwd_f32(x, weight_bar, bias, u0)
    y = jax.block_until_ready(y)

    assert y.shape == (N, OC, H, W), y.shape
    assert jnp.allclose(sigma, s_ref, atol=1e-5, rtol=1e-5), "sigma mismatch"
    assert jnp.allclose(u_new, u_ref, atol=1e-5, rtol=1e-5), "u mismatch"
    assert jnp.allclose(v_new, v_ref, atol=1e-5, rtol=1e-5), "v mismatch"
    assert jnp.allclose(y, y_ref, atol=1e-4, rtol=1e-4), "output mismatch (f32)"

    # Default bf16-operand MXU path (f32 accumulation), relaxed tolerance.
    fwd_bf16 = jax.jit(functools.partial(
        spectral_norm_conv2d_forward, stride=stride, padding=padding,
        dilation=dilation, power_iterations=power_iterations, row_block=8))
    y_bf16, _, _, _ = fwd_bf16(x, weight_bar, bias, u0)
    y_bf16 = jax.block_until_ready(y_bf16)
    assert jnp.allclose(y_bf16, y_ref, atol=5e-2, rtol=5e-2), "output mismatch (bf16)"

    print("KERNEL_OK")
</pallas_src>

<mosaic_0001>
module attributes {stable_mosaic.version = 11 : i64} {
  func.func @_power_iteration_kernel(%arg0: memref<8x36xf32, #tpu.memory_space<vmem>>, %arg1: memref<8x1xf32, #tpu.memory_space<vmem>>, %arg2: memref<8x1xf32, #tpu.memory_space<vmem>>, %arg3: memref<1x36xf32, #tpu.memory_space<vmem>>, %arg4: memref<1x1xf32, #tpu.memory_space<vmem>>, %arg5: memref<1x1xf32, #tpu.memory_space<vmem>>) attributes {dimension_semantics = [], scalar_prefetch = 0 : i64, scratch_operands = 0 : i64, tpu.core_type = #tpu.core_type<tc>} {
    %c0 = arith.constant 0 : index
    %c0_0 = arith.constant 0 : index
    %0 = vector.load %arg0[%c0, %c0_0] : memref<8x36xf32, #tpu.memory_space<vmem>>, vector<8x36xf32>
    %c0_1 = arith.constant 0 : index
    %c0_2 = arith.constant 0 : index
    %1 = vector.load %arg1[%c0_1, %c0_2] : memref<8x1xf32, #tpu.memory_space<vmem>>, vector<8x1xf32>
    %2 = vector.broadcast %1 : vector<8x1xf32> to vector<8x36xf32>
    %3 = arith.mulf %0, %2 : vector<8x36xf32>
    %cst = arith.constant dense<0.000000e+00> : vector<36xf32>
    %4 = vector.multi_reduction <add>, %3, %cst [0] : vector<8x36xf32> to vector<36xf32>
    %5 = vector.shape_cast %4 : vector<36xf32> to vector<1x36xf32>
    %6 = arith.mulf %5, %5 : vector<1x36xf32>
    %7 = vector.shape_cast %6 : vector<1x36xf32> to vector<1x1x36xf32>
    %cst_3 = arith.constant dense<0.000000e+00> : vector<1xf32>
    %8 = vector.multi_reduction <add>, %7, %cst_3 [1, 2] : vector<1x1x36xf32> to vector<1xf32>
    %9 = vector.shape_cast %8 : vector<1xf32> to vector<1x1x1xf32>
    %10 = vector.extract %9[0, 0, 0] : f32 from vector<1x1x1xf32>
    %11 = vector.broadcast %10 : f32 to vector<1x1xf32>
    %12 = math.sqrt %11 : vector<1x1xf32>
    %cst_4 = arith.constant 9.99999996E-13 : f32
    %13 = vector.broadcast %cst_4 : f32 to vector<1x1xf32>
    %14 = arith.addf %12, %13 : vector<1x1xf32>
    %15 = vector.broadcast %14 : vector<1x1xf32> to vector<1x36xf32>
    %16 = arith.divf %5, %15 : vector<1x36xf32>
    %17 = vector.broadcast %16 : vector<1x36xf32> to vector<8x36xf32>
    %18 = arith.mulf %0, %17 : vector<8x36xf32>
    %cst_5 = arith.constant dense<0.000000e+00> : vector<8xf32>
    %19 = vector.multi_reduction <add>, %18, %cst_5 [1] : vector<8x36xf32> to vector<8xf32>
    %20 = vector.shape_cast %19 : vector<8xf32> to vector<8x1xf32>
    %21 = arith.mulf %20, %20 : vector<8x1xf32>
    %22 = vector.shape_cast %21 : vector<8x1xf32> to vector<1x8x1xf32>
    %cst_6 = arith.constant dense<0.000000e+00> : vector<1xf32>
    %23 = vector.multi_reduction <add>, %22, %cst_6 [1, 2] : vector<1x8x1xf32> to vector<1xf32>
    %24 = vector.shape_cast %23 : vector<1xf32> to vector<1x1x1xf32>
    %25 = vector.extract %24[0, 0, 0] : f32 from vector<1x1x1xf32>
    %26 = vector.broadcast %25 : f32 to vector<1x1xf32>
    %27 = math.sqrt %26 : vector<1x1xf32>
    %cst_7 = arith.constant 9.99999996E-13 : f32
    %28 = vector.broadcast %cst_7 : f32 to vector<1x1xf32>
    %29 = arith.addf %27, %28 : vector<1x1xf32>
    %30 = vector.broadcast %29 : vector<1x1xf32> to vector<8x1xf32>
    %31 = arith.divf %20, %30 : vector<8x1xf32>
    %32 = vector.broadcast %16 : vector<1x36xf32> to vector<8x36xf32>
    %33 = arith.mulf %0, %32 : vector<8x36xf32>
    %cst_8 = arith.constant dense<0.000000e+00> : vector<8xf32>
    %34 = vector.multi_reduction <add>, %33, %cst_8 [1] : vector<8x36xf32> to vector<8xf32>
    %35 = vector.shape_cast %34 : vector<8xf32> to vector<8x1xf32>
    %36 = arith.mulf %31, %35 : vector<8x1xf32>
    %37 = vector.shape_cast %36 : vector<8x1xf32> to vector<1x8x1xf32>
    %cst_9 = arith.constant dense<0.000000e+00> : vector<1xf32>
    %38 = vector.multi_reduction <add>, %37, %cst_9 [1, 2] : vector<1x8x1xf32> to vector<1xf32>
    %39 = vector.shape_cast %38 : vector<1xf32> to vector<1x1x1xf32>
    %40 = vector.extract %39[0, 0, 0] : f32 from vector<1x1x1xf32>
    %41 = vector.broadcast %40 : f32 to vector<1x1xf32>
    %c0_10 = arith.constant 0 : index
    %c0_11 = arith.constant 0 : index
    %42 = vector.load %arg2[%c0_10, %c0_11] : memref<8x1xf32, #tpu.memory_space<vmem>>, vector<8x1xf32>
    tpu.vector_store %arg2[%c0_10, %c0_11], %31 {strides = array<i32>} : memref<8x1xf32, #tpu.memory_space<vmem>>, vector<8x1xf32>,
    %c0_12 = arith.constant 0 : index
    %c0_13 = arith.constant 0 : index
    %43 = vector.load %arg3[%c0_12, %c0_13] : memref<1x36xf32, #tpu.memory_space<vmem>>, vector<1x36xf32>
    tpu.vector_store %arg3[%c0_12, %c0_13], %16 {strides = array<i32>} : memref<1x36xf32, #tpu.memory_space<vmem>>, vector<1x36xf32>,
    %c0_14 = arith.constant 0 : index
    %c0_15 = arith.constant 0 : index
    %44 = vector.load %arg4[%c0_14, %c0_15] : memref<1x1xf32, #tpu.memory_space<vmem>>, vector<1x1xf32>
    tpu.vector_store %arg4[%c0_14, %c0_15], %41 {strides = array<i32>} : memref<1x1xf32, #tpu.memory_space<vmem>>, vector<1x1xf32>,
    %45 = tpu.reciprocal %41 : vector<1x1xf32> -> vector<1x1xf32>
    %c0_16 = arith.constant 0 : index
    %c0_17 = arith.constant 0 : index
    %46 = vector.load %arg5[%c0_16, %c0_17] : memref<1x1xf32, #tpu.memory_space<vmem>>, vector<1x1xf32>
    tpu.vector_store %arg5[%c0_16, %c0_17], %45 {strides = array<i32>} : memref<1x1xf32, #tpu.memory_space<vmem>>, vector<1x1xf32>,
    return
  }
}

module attributes {stable_mosaic.version = 11 : i64} {
  func.func @conv_kernel(%arg0: i32, %arg1: i32, %arg2: memref<1x1x18x4xf32, #tpu.memory_space<vmem>>, %arg3: memref<1x1x18x4xf32, #tpu.memory_space<vmem>>, %arg4: memref<1x1x18x4xf32, #tpu.memory_space<vmem>>, %arg5: memref<1x1x18x4xf32, #tpu.memory_space<vmem>>, %arg6: memref<1x1x18x4xf32, #tpu.memory_space<vmem>>, %arg7: memref<1x1x18x4xf32, #tpu.memory_space<vmem>>, %arg8: memref<1x1x18x4xf32, #tpu.memory_space<vmem>>, %arg9: memref<1x1x18x4xf32, #tpu.memory_space<vmem>>, %arg10: memref<1x1x18x4xf32, #tpu.memory_space<vmem>>, %arg11: memref<1x1x18x4xf32, #tpu.memory_space<vmem>>, %arg12: memref<9x4x8xf32, #tpu.memory_space<vmem>>, %arg13: memref<1x8xf32, #tpu.memory_space<vmem>>, %arg14: memref<1x8x16x8xf32, #tpu.memory_space<vmem>>) attributes {dimension_semantics = [#tpu.dimension_semantics<parallel>, #tpu.dimension_semantics<parallel>], iteration_bounds = array<i64: 2, 2>, scalar_prefetch = 0 : i64, scratch_operands = 0 : i64, tpu.core_type = #tpu.core_type<tc>, window_params = [{transform_indices = @transform_0, window_bounds = array<i64: 1, 1, 18, 4>}, {transform_indices = @transform_1, window_bounds = array<i64: 1, 1, 18, 4>}, {transform_indices = @transform_2, window_bounds = array<i64: 1, 1, 18, 4>}, {transform_indices = @transform_3, window_bounds = array<i64: 1, 1, 18, 4>}, {transform_indices = @transform_4, window_bounds = array<i64: 1, 1, 18, 4>}, {transform_indices = @transform_5, window_bounds = array<i64: 1, 1, 18, 4>}, {transform_indices = @transform_6, window_bounds = array<i64: 1, 1, 18, 4>}, {transform_indices = @transform_7, window_bounds = array<i64: 1, 1, 18, 4>}, {transform_indices = @transform_8, window_bounds = array<i64: 1, 1, 18, 4>}, {transform_indices = @transform_9, window_bounds = array<i64: 1, 1, 18, 4>}, {pipeline_mode = #tpu.pipeline_mode<synchronous>, transform_indices = @transform_10, window_bounds = array<i64: 9, 4, 8>}, {pipeline_mode = #tpu.pipeline_mode<synchronous>, transform_indices = @transform_11, window_bounds = array<i64: 1, 8>}, {transform_indices = @transform_12, window_bounds = array<i64: 1, 8, 16, 8>}]} {
    %c0 = arith.constant 0 : index
    %c0_0 = arith.constant 0 : index
    %c0_1 = arith.constant 0 : index
    %c0_2 = arith.constant 0 : index
    %0 = vector.load %arg2[%c0, %c0_0, %c0_1, %c0_2] : memref<1x1x18x4xf32, #tpu.memory_space<vmem>>, vector<1x1x18x4xf32>
    %1 = vector.shape_cast %0 : vector<1x1x18x4xf32> to vector<18x4xf32>
    %c0_3 = arith.constant 0 : index
    %c0_4 = arith.constant 0 : index
    %c0_5 = arith.constant 0 : index
    %c0_6 = arith.constant 0 : index
    %2 = vector.load %arg3[%c0_3, %c0_4, %c0_5, %c0_6] : memref<1x1x18x4xf32, #tpu.memory_space<vmem>>, vector<1x1x18x4xf32>
    %3 = vector.shape_cast %2 : vector<1x1x18x4xf32> to vector<18x4xf32>
    %c0_7 = arith.constant 0 : index
    %c0_8 = arith.constant 0 : index
    %c0_9 = arith.constant 0 : index
    %c0_10 = arith.constant 0 : index
    %4 = vector.load %arg4[%c0_7, %c0_8, %c0_9, %c0_10] : memref<1x1x18x4xf32, #tpu.memory_space<vmem>>, vector<1x1x18x4xf32>
    %5 = vector.shape_cast %4 : vector<1x1x18x4xf32> to vector<18x4xf32>
    %c0_11 = arith.constant 0 : index
    %c0_12 = arith.constant 0 : index
    %c0_13 = arith.constant 0 : index
    %c0_14 = arith.constant 0 : index
    %6 = vector.load %arg5[%c0_11, %c0_12, %c0_13, %c0_14] : memref<1x1x18x4xf32, #tpu.memory_space<vmem>>, vector<1x1x18x4xf32>
    %7 = vector.shape_cast %6 : vector<1x1x18x4xf32> to vector<18x4xf32>
    %c0_15 = arith.constant 0 : index
    %c0_16 = arith.constant 0 : index
    %c0_17 = arith.constant 0 : index
    %c0_18 = arith.constant 0 : index
    %8 = vector.load %arg6[%c0_15, %c0_16, %c0_17, %c0_18] : memref<1x1x18x4xf32, #tpu.memory_space<vmem>>, vector<1x1x18x4xf32>
    %9 = vector.shape_cast %8 : vector<1x1x18x4xf32> to vector<18x4xf32>
    %c0_19 = arith.constant 0 : index
    %c0_20 = arith.constant 0 : index
    %c0_21 = arith.constant 0 : index
    %c0_22 = arith.constant 0 : index
    %10 = vector.load %arg7[%c0_19, %c0_20, %c0_21, %c0_22] : memref<1x1x18x4xf32, #tpu.memory_space<vmem>>, vector<1x1x18x4xf32>
    %11 = vector.shape_cast %10 : vector<1x1x18x4xf32> to vector<18x4xf32>
    %c0_23 = arith.constant 0 : index
    %c0_24 = arith.constant 0 : index
    %c0_25 = arith.constant 0 : index
    %c0_26 = arith.constant 0 : index
    %12 = vector.load %arg8[%c0_23, %c0_24, %c0_25, %c0_26] : memref<1x1x18x4xf32, #tpu.memory_space<vmem>>, vector<1x1x18x4xf32>
    %13 = vector.shape_cast %12 : vector<1x1x18x4xf32> to vector<18x4xf32>
    %c0_27 = arith.constant 0 : index
    %c0_28 = arith.constant 0 : index
    %c0_29 = arith.constant 0 : index
    %c0_30 = arith.constant 0 : index
    %14 = vector.load %arg9[%c0_27, %c0_28, %c0_29, %c0_30] : memref<1x1x18x4xf32, #tpu.memory_space<vmem>>, vector<1x1x18x4xf32>
    %15 = vector.shape_cast %14 : vector<1x1x18x4xf32> to vector<18x4xf32>
    %c0_31 = arith.constant 0 : index
    %c0_32 = arith.constant 0 : index
    %c0_33 = arith.constant 0 : index
    %c0_34 = arith.constant 0 : index
    %16 = vector.load %arg10[%c0_31, %c0_32, %c0_33, %c0_34] : memref<1x1x18x4xf32, #tpu.memory_space<vmem>>, vector<1x1x18x4xf32>
    %17 = vector.shape_cast %16 : vector<1x1x18x4xf32> to vector<18x4xf32>
    %c0_35 = arith.constant 0 : index
    %c0_36 = arith.constant 0 : index
    %c0_37 = arith.constant 0 : index
    %c0_38 = arith.constant 0 : index
    %18 = vector.load %arg11[%c0_35, %c0_36, %c0_37, %c0_38] : memref<1x1x18x4xf32, #tpu.memory_space<vmem>>, vector<1x1x18x4xf32>
    %19 = vector.shape_cast %18 : vector<1x1x18x4xf32> to vector<18x4xf32>
    %c0_39 = arith.constant 0 : index
    %c0_40 = arith.constant 0 : index
    %20 = vector.load %arg13[%c0_39, %c0_40] : memref<1x8xf32, #tpu.memory_space<vmem>>, vector<1x8xf32>
    %cst = arith.constant 0.000000e+00 : f32
    %21 = vector.broadcast %cst : f32 to vector<16x8xf32>
    %cst_41 = arith.constant 0.000000e+00 : f32
    %22 = vector.broadcast %cst_41 : f32 to vector<16x8xf32>
    %cst_42 = arith.constant 0.000000e+00 : f32
    %23 = vector.broadcast %cst_42 : f32 to vector<16x8xf32>
    %cst_43 = arith.constant 0.000000e+00 : f32
    %24 = vector.broadcast %cst_43 : f32 to vector<16x8xf32>
    %cst_44 = arith.constant 0.000000e+00 : f32
    %25 = vector.broadcast %cst_44 : f32 to vector<16x8xf32>
    %cst_45 = arith.constant 0.000000e+00 : f32
    %26 = vector.broadcast %cst_45 : f32 to vector<16x8xf32>
    %cst_46 = arith.constant 0.000000e+00 : f32
    %27 = vector.broadcast %cst_46 : f32 to vector<16x8xf32>
    %cst_47 = arith.constant 0.000000e+00 : f32
    %28 = vector.broadcast %cst_47 : f32 to vector<16x8xf32>
    %c0_48 = arith.constant 0 : index
    %c0_49 = arith.constant 0 : index
    %c0_50 = arith.constant 0 : index
    %29 = vector.load %arg12[%c0_48, %c0_49, %c0_50] : memref<9x4x8xf32, #tpu.memory_space<vmem>>, vector<1x4x8xf32>
    %30 = vector.shape_cast %29 : vector<1x4x8xf32> to vector<4x8xf32>
    %31 = vector.extract_strided_slice %1 {offsets = [0, 0], sizes = [16, 4], strides = [1, 1]} : vector<18x4xf32> to vector<16x4xf32>
    %cst_51 = arith.constant dense<0.000000e+00> : vector<16x8xf32>
    %32 = tpu.matmul %31, %30, %cst_51 {dimension_numbers = #tpu.dot_dimension_numbers<[1], [0], [0], [1], [0, 0, 1, 1], [], []>} : vector<16x4xf32>, vector<4x8xf32>, vector<16x8xf32> -> vector<16x8xf32>
    %33 = arith.addf %21, %32 : vector<16x8xf32>
    %34 = vector.extract_strided_slice %3 {offsets = [0, 0], sizes = [16, 4], strides = [1, 1]} : vector<18x4xf32> to vector<16x4xf32>
    %cst_52 = arith.constant dense<0.000000e+00> : vector<16x8xf32>
    %35 = tpu.matmul %34, %30, %cst_52 {dimension_numbers = #tpu.dot_dimension_numbers<[1], [0], [0], [1], [0, 0, 1, 1], [], []>} : vector<16x4xf32>, vector<4x8xf32>, vector<16x8xf32> -> vector<16x8xf32>
    %36 = arith.addf %22, %35 : vector<16x8xf32>
    %37 = vector.extract_strided_slice %5 {offsets = [0, 0], sizes = [16, 4], strides = [1, 1]} : vector<18x4xf32> to vector<16x4xf32>
    %cst_53 = arith.constant dense<0.000000e+00> : vector<16x8xf32>
    %38 = tpu.matmul %37, %30, %cst_53 {dimension_numbers = #tpu.dot_dimension_numbers<[1], [0], [0], [1], [0, 0, 1, 1], [], []>} : vector<16x4xf32>, vector<4x8xf32>, vector<16x8xf32> -> vector<16x8xf32>
    %39 = arith.addf %23, %38 : vector<16x8xf32>
    %40 = vector.extract_strided_slice %7 {offsets = [0, 0], sizes = [16, 4], strides = [1, 1]} : vector<18x4xf32> to vector<16x4xf32>
    %cst_54 = arith.constant dense<0.000000e+00> : vector<16x8xf32>
    %41 = tpu.matmul %40, %30, %cst_54 {dimension_numbers = #tpu.dot_dimension_numbers<[1], [0], [0], [1], [0, 0, 1, 1], [], []>} : vector<16x4xf32>, vector<4x8xf32>, vector<16x8xf32> -> vector<16x8xf32>
    %42 = arith.addf %24, %41 : vector<16x8xf32>
    %43 = vector.extract_strided_slice %9 {offsets = [0, 0], sizes = [16, 4], strides = [1, 1]} : vector<18x4xf32> to vector<16x4xf32>
    %cst_55 = arith.constant dense<0.000000e+00> : vector<16x8xf32>
    %44 = tpu.matmul %43, %30, %cst_55 {dimension_numbers = #tpu.dot_dimension_numbers<[1], [0], [0], [1], [0, 0, 1, 1], [], []>} : vector<16x4xf32>, vector<4x8xf32>, vector<16x8xf32> -> vector<16x8xf32>
    %45 = arith.addf %25, %44 : vector<16x8xf32>
    %46 = vector.extract_strided_slice %11 {offsets = [0, 0], sizes = [16, 4], strides = [1, 1]} : vector<18x4xf32> to vector<16x4xf32>
    %cst_56 = arith.constant dense<0.000000e+00> : vector<16x8xf32>
    %47 = tpu.matmul %46, %30, %cst_56 {dimension_numbers = #tpu.dot_dimension_numbers<[1], [0], [0], [1], [0, 0, 1, 1], [], []>} : vector<16x4xf32>, vector<4x8xf32>, vector<16x8xf32> -> vector<16x8xf32>
    %48 = arith.addf %26, %47 : vector<16x8xf32>
    %49 = vector.extract_strided_slice %13 {offsets = [0, 0], sizes = [16, 4], strides = [1, 1]} : vector<18x4xf32> to vector<16x4xf32>
    %cst_57 = arith.constant dense<0.000000e+00> : vector<16x8xf32>
    %50 = tpu.matmul %49, %30, %cst_57 {dimension_numbers = #tpu.dot_dimension_numbers<[1], [0], [0], [1], [0, 0, 1, 1], [], []>} : vector<16x4xf32>, vector<4x8xf32>, vector<16x8xf32> -> vector<16x8xf32>
    %51 = arith.addf %27, %50 : vector<16x8xf32>
    %52 = vector.extract_strided_slice %15 {offsets = [0, 0], sizes = [16, 4], strides = [1, 1]} : vector<18x4xf32> to vector<16x4xf32>
    %cst_58 = arith.constant dense<0.000000e+00> : vector<16x8xf32>
    %53 = tpu.matmul %52, %30, %cst_58 {dimension_numbers = #tpu.dot_dimension_numbers<[1], [0], [0], [1], [0, 0, 1, 1], [], []>} : vector<16x4xf32>, vector<4x8xf32>, vector<16x8xf32> -> vector<16x8xf32>
    %54 = arith.addf %28, %53 : vector<16x8xf32>
    %c1 = arith.constant 1 : index
    %c0_59 = arith.constant 0 : index
    %c0_60 = arith.constant 0 : index
    %55 = vector.load %arg12[%c1, %c0_59, %c0_60] : memref<9x4x8xf32, #tpu.memory_space<vmem>>, vector<1x4x8xf32>
    %56 = vector.shape_cast %55 : vector<1x4x8xf32> to vector<4x8xf32>
    %57 = vector.extract_strided_slice %1 {offsets = [1, 0], sizes = [16, 4], strides = [1, 1]} : vector<18x4xf32> to vector<16x4xf32>
    %cst_61 = arith.constant dense<0.000000e+00> : vector<16x8xf32>
    %58 = tpu.matmul %57, %56, %cst_61 {dimension_numbers = #tpu.dot_dimension_numbers<[1], [0], [0], [1], [0, 0, 1, 1], [], []>} : vector<16x4xf32>, vector<4x8xf32>, vector<16x8xf32> -> vector<16x8xf32>
    %59 = arith.addf %33, %58 : vector<16x8xf32>
    %60 = vector.extract_strided_slice %3 {offsets = [1, 0], sizes = [16, 4], strides = [1, 1]} : vector<18x4xf32> to vector<16x4xf32>
    %cst_62 = arith.constant dense<0.000000e+00> : vector<16x8xf32>
    %61 = tpu.matmul %60, %56, %cst_62 {dimension_numbers = #tpu.dot_dimension_numbers<[1], [0], [0], [1], [0, 0, 1, 1], [], []>} : vector<16x4xf32>, vector<4x8xf32>, vector<16x8xf32> -> vector<16x8xf32>
    %62 = arith.addf %36, %61 : vector<16x8xf32>
    %63 = vector.extract_strided_slice %5 {offsets = [1, 0], sizes = [16, 4], strides = [1, 1]} : vector<18x4xf32> to vector<16x4xf32>
    %cst_63 = arith.constant dense<0.000000e+00> : vector<16x8xf32>
    %64 = tpu.matmul %63, %56, %cst_63 {dimension_numbers = #tpu.dot_dimension_numbers<[1], [0], [0], [1], [0, 0, 1, 1], [], []>} : vector<16x4xf32>, vector<4x8xf32>, vector<16x8xf32> -> vector<16x8xf32>
    %65 = arith.addf %39, %64 : vector<16x8xf32>
    %66 = vector.extract_strided_slice %7 {offsets = [1, 0], sizes = [16, 4], strides = [1, 1]} : vector<18x4xf32> to vector<16x4xf32>
    %cst_64 = arith.constant dense<0.000000e+00> : vector<16x8xf32>
    %67 = tpu.matmul %66, %56, %cst_64 {dimension_numbers = #tpu.dot_dimension_numbers<[1], [0], [0], [1], [0, 0, 1, 1], [], []>} : vector<16x4xf32>, vector<4x8xf32>, vector<16x8xf32> -> vector<16x8xf32>
    %68 = arith.addf %42, %67 : vector<16x8xf32>
    %69 = vector.extract_strided_slice %9 {offsets = [1, 0], sizes = [16, 4], strides = [1, 1]} : vector<18x4xf32> to vector<16x4xf32>
    %cst_65 = arith.constant dense<0.000000e+00> : vector<16x8xf32>
    %70 = tpu.matmul %69, %56, %cst_65 {dimension_numbers = #tpu.dot_dimension_numbers<[1], [0], [0], [1], [0, 0, 1, 1], [], []>} : vector<16x4xf32>, vector<4x8xf32>, vector<16x8xf32> -> vector<16x8xf32>
    %71 = arith.addf %45, %70 : vector<16x8xf32>
    %72 = vector.extract_strided_slice %11 {offsets = [1, 0], sizes = [16, 4], strides = [1, 1]} : vector<18x4xf32> to vector<16x4xf32>
    %cst_66 = arith.constant dense<0.000000e+00> : vector<16x8xf32>
    %73 = tpu.matmul %72, %56, %cst_66 {dimension_numbers = #tpu.dot_dimension_numbers<[1], [0], [0], [1], [0, 0, 1, 1], [], []>} : vector<16x4xf32>, vector<4x8xf32>, vector<16x8xf32> -> vector<16x8xf32>
    %74 = arith.addf %48, %73 : vector<16x8xf32>
    %75 = vector.extract_strided_slice %13 {offsets = [1, 0], sizes = [16, 4], strides = [1, 1]} : vector<18x4xf32> to vector<16x4xf32>
    %cst_67 = arith.constant dense<0.000000e+00> : vector<16x8xf32>
    %76 = tpu.matmul %75, %56, %cst_67 {dimension_numbers = #tpu.dot_dimension_numbers<[1], [0], [0], [1], [0, 0, 1, 1], [], []>} : vector<16x4xf32>, vector<4x8xf32>, vector<16x8xf32> -> vector<16x8xf32>
    %77 = arith.addf %51, %76 : vector<16x8xf32>
    %78 = vector.extract_strided_slice %15 {offsets = [1, 0], sizes = [16, 4], strides = [1, 1]} : vector<18x4xf32> to vector<16x4xf32>
    %cst_68 = arith.constant dense<0.000000e+00> : vector<16x8xf32>
    %79 = tpu.matmul %78, %56, %cst_68 {dimension_numbers = #tpu.dot_dimension_numbers<[1], [0], [0], [1], [0, 0, 1, 1], [], []>} : vector<16x4xf32>, vector<4x8xf32>, vector<16x8xf32> -> vector<16x8xf32>
    %80 = arith.addf %54, %79 : vector<16x8xf32>
    %c2 = arith.constant 2 : index
    %c0_69 = arith.constant 0 : index
    %c0_70 = arith.constant 0 : index
    %81 = vector.load %arg12[%c2, %c0_69, %c0_70] : memref<9x4x8xf32, #tpu.memory_space<vmem>>, vector<1x4x8xf32>
    %82 = vector.shape_cast %81 : vector<1x4x8xf32> to vector<4x8xf32>
    %83 = vector.extract_strided_slice %1 {offsets = [2, 0], sizes = [16, 4], strides = [1, 1]} : vector<18x4xf32> to vector<16x4xf32>
    %cst_71 = arith.constant dense<0.000000e+00> : vector<16x8xf32>
    %84 = tpu.matmul %83, %82, %cst_71 {dimension_numbers = #tpu.dot_dimension_numbers<[1], [0], [0], [1], [0, 0, 1, 1], [], []>} : vector<16x4xf32>, vector<4x8xf32>, vector<16x8xf32> -> vector<16x8xf32>
    %85 = arith.addf %59, %84 : vector<16x8xf32>
    %86 = vector.extract_strided_slice %3 {offsets = [2, 0], sizes = [16, 4], strides = [1, 1]} : vector<18x4xf32> to vector<16x4xf32>
    %cst_72 = arith.constant dense<0.000000e+00> : vector<16x8xf32>
    %87 = tpu.matmul %86, %82, %cst_72 {dimension_numbers = #tpu.dot_dimension_numbers<[1], [0], [0], [1], [0, 0, 1, 1], [], []>} : vector<16x4xf32>, vector<4x8xf32>, vector<16x8xf32> -> vector<16x8xf32>
    %88 = arith.addf %62, %87 : vector<16x8xf32>
    %89 = vector.extract_strided_slice %5 {offsets = [2, 0], sizes = [16, 4], strides = [1, 1]} : vector<18x4xf32> to vector<16x4xf32>
    %cst_73 = arith.constant dense<0.000000e+00> : vector<16x8xf32>
    %90 = tpu.matmul %89, %82, %cst_73 {dimension_numbers = #tpu.dot_dimension_numbers<[1], [0], [0], [1], [0, 0, 1, 1], [], []>} : vector<16x4xf32>, vector<4x8xf32>, vector<16x8xf32> -> vector<16x8xf32>
    %91 = arith.addf %65, %90 : vector<16x8xf32>
    %92 = vector.extract_strided_slice %7 {offsets = [2, 0], sizes = [16, 4], strides = [1, 1]} : vector<18x4xf32> to vector<16x4xf32>
    %cst_74 = arith.constant dense<0.000000e+00> : vector<16x8xf32>
    %93 = tpu.matmul %92, %82, %cst_74 {dimension_numbers = #tpu.dot_dimension_numbers<[1], [0], [0], [1], [0, 0, 1, 1], [], []>} : vector<16x4xf32>, vector<4x8xf32>, vector<16x8xf32> -> vector<16x8xf32>
    %94 = arith.addf %68, %93 : vector<16x8xf32>
    %95 = vector.extract_strided_slice %9 {offsets = [2, 0], sizes = [16, 4], strides = [1, 1]} : vector<18x4xf32> to vector<16x4xf32>
    %cst_75 = arith.constant dense<0.000000e+00> : vector<16x8xf32>
    %96 = tpu.matmul %95, %82, %cst_75 {dimension_numbers = #tpu.dot_dimension_numbers<[1], [0], [0], [1], [0, 0, 1, 1], [], []>} : vector<16x4xf32>, vector<4x8xf32>, vector<16x8xf32> -> vector<16x8xf32>
    %97 = arith.addf %71, %96 : vector<16x8xf32>
    %98 = vector.extract_strided_slice %11 {offsets = [2, 0], sizes = [16, 4], strides = [1, 1]} : vector<18x4xf32> to vector<16x4xf32>
    %cst_76 = arith.constant dense<0.000000e+00> : vector<16x8xf32>
    %99 = tpu.matmul %98, %82, %cst_76 {dimension_numbers = #tpu.dot_dimension_numbers<[1], [0], [0], [1], [0, 0, 1, 1], [], []>} : vector<16x4xf32>, vector<4x8xf32>, vector<16x8xf32> -> vector<16x8xf32>
    %100 = arith.addf %74, %99 : vector<16x8xf32>
    %101 = vector.extract_strided_slice %13 {offsets = [2, 0], sizes = [16, 4], strides = [1, 1]} : vector<18x4xf32> to vector<16x4xf32>
    %cst_77 = arith.constant dense<0.000000e+00> : vector<16x8xf32>
    %102 = tpu.matmul %101, %82, %cst_77 {dimension_numbers = #tpu.dot_dimension_numbers<[1], [0], [0], [1], [0, 0, 1, 1], [], []>} : vector<16x4xf32>, vector<4x8xf32>, vector<16x8xf32> -> vector<16x8xf32>
    %103 = arith.addf %77, %102 : vector<16x8xf32>
    %104 = vector.extract_strided_slice %15 {offsets = [2, 0], sizes = [16, 4], strides = [1, 1]} : vector<18x4xf32> to vector<16x4xf32>
    %cst_78 = arith.constant dense<0.000000e+00> : vector<16x8xf32>
    %105 = tpu.matmul %104, %82, %cst_78 {dimension_numbers = #tpu.dot_dimension_numbers<[1], [0], [0], [1], [0, 0, 1, 1], [], []>} : vector<16x4xf32>, vector<4x8xf32>, vector<16x8xf32> -> vector<16x8xf32>
    %106 = arith.addf %80, %105 : vector<16x8xf32>
    %c3 = arith.constant 3 : index
    %c0_79 = arith.constant 0 : index
    %c0_80 = arith.constant 0 : index
    %107 = vector.load %arg12[%c3, %c0_79, %c0_80] : memref<9x4x8xf32, #tpu.memory_space<vmem>>, vector<1x4x8xf32>
    %108 = vector.shape_cast %107 : vector<1x4x8xf32> to vector<4x8xf32>
    %109 = vector.extract_strided_slice %3 {offsets = [0, 0], sizes = [16, 4], strides = [1, 1]} : vector<18x4xf32> to vector<16x4xf32>
    %cst_81 = arith.constant dense<0.000000e+00> : vector<16x8xf32>
    %110 = tpu.matmul %109, %108, %cst_81 {dimension_numbers = #tpu.dot_dimension_numbers<[1], [0], [0], [1], [0, 0, 1, 1], [], []>} : vector<16x4xf32>, vector<4x8xf32>, vector<16x8xf32> -> vector<16x8xf32>
    %111 = arith.addf %85, %110 : vector<16x8xf32>
    %112 = vector.extract_strided_slice %5 {offsets = [0, 0], sizes = [16, 4], strides = [1, 1]} : vector<18x4xf32> to vector<16x4xf32>
    %cst_82 = arith.constant dense<0.000000e+00> : vector<16x8xf32>
    %113 = tpu.matmul %112, %108, %cst_82 {dimension_numbers = #tpu.dot_dimension_numbers<[1], [0], [0], [1], [0, 0, 1, 1], [], []>} : vector<16x4xf32>, vector<4x8xf32>, vector<16x8xf32> -> vector<16x8xf32>
    %114 = arith.addf %88, %113 : vector<16x8xf32>
    %115 = vector.extract_strided_slice %7 {offsets = [0, 0], sizes = [16, 4], strides = [1, 1]} : vector<18x4xf32> to vector<16x4xf32>
    %cst_83 = arith.constant dense<0.000000e+00> : vector<16x8xf32>
    %116 = tpu.matmul %115, %108, %cst_83 {dimension_numbers = #tpu.dot_dimension_numbers<[1], [0], [0], [1], [0, 0, 1, 1], [], []>} : vector<16x4xf32>, vector<4x8xf32>, vector<16x8xf32> -> vector<16x8xf32>
    %117 = arith.addf %91, %116 : vector<16x8xf32>
    %118 = vector.extract_strided_slice %9 {offsets = [0, 0], sizes = [16, 4], strides = [1, 1]} : vector<18x4xf32> to vector<16x4xf32>
    %cst_84 = arith.constant dense<0.000000e+00> : vector<16x8xf32>
    %119 = tpu.matmul %118, %108, %cst_84 {dimension_numbers = #tpu.dot_dimension_numbers<[1], [0], [0], [1], [0, 0, 1, 1], [], []>} : vector<16x4xf32>, vector<4x8xf32>, vector<16x8xf32> -> vector<16x8xf32>
    %120 = arith.addf %94, %119 : vector<16x8xf32>
    %121 = vector.extract_strided_slice %11 {offsets = [0, 0], sizes = [16, 4], strides = [1, 1]} : vector<18x4xf32> to vector<16x4xf32>
    %cst_85 = arith.constant dense<0.000000e+00> : vector<16x8xf32>
    %122 = tpu.matmul %121, %108, %cst_85 {dimension_numbers = #tpu.dot_dimension_numbers<[1], [0], [0], [1], [0, 0, 1, 1], [], []>} : vector<16x4xf32>, vector<4x8xf32>, vector<16x8xf32> -> vector<16x8xf32>
    %123 = arith.addf %97, %122 : vector<16x8xf32>
    %124 = vector.extract_strided_slice %13 {offsets = [0, 0], sizes = [16, 4], strides = [1, 1]} : vector<18x4xf32> to vector<16x4xf32>
    %cst_86 = arith.constant dense<0.000000e+00> : vector<16x8xf32>
    %125 = tpu.matmul %124, %108, %cst_86 {dimension_numbers = #tpu.dot_dimension_numbers<[1], [0], [0], [1], [0, 0, 1, 1], [], []>} : vector<16x4xf32>, vector<4x8xf32>, vector<16x8xf32> -> vector<16x8xf32>
    %126 = arith.addf %100, %125 : vector<16x8xf32>
    %127 = vector.extract_strided_slice %15 {offsets = [0, 0], sizes = [16, 4], strides = [1, 1]} : vector<18x4xf32> to vector<16x4xf32>
    %cst_87 = arith.constant dense<0.000000e+00> : vector<16x8xf32>
    %128 = tpu.matmul %127, %108, %cst_87 {dimension_numbers = #tpu.dot_dimension_numbers<[1], [0], [0], [1], [0, 0, 1, 1], [], []>} : vector<16x4xf32>, vector<4x8xf32>, vector<16x8xf32> -> vector<16x8xf32>
    %129 = arith.addf %103, %128 : vector<16x8xf32>
    %130 = vector.extract_strided_slice %17 {offsets = [0, 0], sizes = [16, 4], strides = [1, 1]} : vector<18x4xf32> to vector<16x4xf32>
    %cst_88 = arith.constant dense<0.000000e+00> : vector<16x8xf32>
    %131 = tpu.matmul %130, %108, %cst_88 {dimension_numbers = #tpu.dot_dimension_numbers<[1], [0], [0], [1], [0, 0, 1, 1], [], []>} : vector<16x4xf32>, vector<4x8xf32>, vector<16x8xf32> -> vector<16x8xf32>
    %132 = arith.addf %106, %131 : vector<16x8xf32>
    %c4 = arith.constant 4 : index
    %c0_89 = arith.constant 0 : index
    %c0_90 = arith.constant 0 : index
    %133 = vector.load %arg12[%c4, %c0_89, %c0_90] : memref<9x4x8xf32, #tpu.memory_space<vmem>>, vector<1x4x8xf32>
    %134 = vector.shape_cast %133 : vector<1x4x8xf32> to vector<4x8xf32>
    %135 = vector.extract_strided_slice %3 {offsets = [1, 0], sizes = [16, 4], strides = [1, 1]} : vector<18x4xf32> to vector<16x4xf32>
    %cst_91 = arith.constant dense<0.000000e+00> : vector<16x8xf32>
    %136 = tpu.matmul %135, %134, %cst_91 {dimension_numbers = #tpu.dot_dimension_numbers<[1], [0], [0], [1], [0, 0, 1, 1], [], []>} : vector<16x4xf32>, vector<4x8xf32>, vector<16x8xf32> -> vector<16x8xf32>
    %137 = arith.addf %111, %136 : vector<16x8xf32>
    %138 = vector.extract_strided_slice %5 {offsets = [1, 0], sizes = [16, 4], strides = [1, 1]} : vector<18x4xf32> to vector<16x4xf32>
    %cst_92 = arith.constant dense<0.000000e+00> : vector<16x8xf32>
    %139 = tpu.matmul %138, %134, %cst_92 {dimension_numbers = #tpu.dot_dimension_numbers<[1], [0], [0], [1], [0, 0, 1, 1], [], []>} : vector<16x4xf32>, vector<4x8xf32>, vector<16x8xf32> -> vector<16x8xf32>
    %140 = arith.addf %114, %139 : vector<16x8xf32>
    %141 = vector.extract_strided_slice %7 {offsets = [1, 0], sizes = [16, 4], strides = [1, 1]} : vector<18x4xf32> to vector<16x4xf32>
    %cst_93 = arith.constant dense<0.000000e+00> : vector<16x8xf32>
    %142 = tpu.matmul %141, %134, %cst_93 {dimension_numbers = #tpu.dot_dimension_numbers<[1], [0], [0], [1], [0, 0, 1, 1], [], []>} : vector<16x4xf32>, vector<4x8xf32>, vector<16x8xf32> -> vector<16x8xf32>
    %143 = arith.addf %117, %142 : vector<16x8xf32>
    %144 = vector.extract_strided_slice %9 {offsets = [1, 0], sizes = [16, 4], strides = [1, 1]} : vector<18x4xf32> to vector<16x4xf32>
    %cst_94 = arith.constant dense<0.000000e+00> : vector<16x8xf32>
    %145 = tpu.matmul %144, %134, %cst_94 {dimension_numbers = #tpu.dot_dimension_numbers<[1], [0], [0], [1], [0, 0, 1, 1], [], []>} : vector<16x4xf32>, vector<4x8xf32>, vector<16x8xf32> -> vector<16x8xf32>
    %146 = arith.addf %120, %145 : vector<16x8xf32>
    %147 = vector.extract_strided_slice %11 {offsets = [1, 0], sizes = [16, 4], strides = [1, 1]} : vector<18x4xf32> to vector<16x4xf32>
    %cst_95 = arith.constant dense<0.000000e+00> : vector<16x8xf32>
    %148 = tpu.matmul %147, %134, %cst_95 {dimension_numbers = #tpu.dot_dimension_numbers<[1], [0], [0], [1], [0, 0, 1, 1], [], []>} : vector<16x4xf32>, vector<4x8xf32>, vector<16x8xf32> -> vector<16x8xf32>
    %149 = arith.addf %123, %148 : vector<16x8xf32>
    %150 = vector.extract_strided_slice %13 {offsets = [1, 0], sizes = [16, 4], strides = [1, 1]} : vector<18x4xf32> to vector<16x4xf32>
    %cst_96 = arith.constant dense<0.000000e+00> : vector<16x8xf32>
    %151 = tpu.matmul %150, %134, %cst_96 {dimension_numbers = #tpu.dot_dimension_numbers<[1], [0], [0], [1], [0, 0, 1, 1], [], []>} : vector<16x4xf32>, vector<4x8xf32>, vector<16x8xf32> -> vector<16x8xf32>
    %152 = arith.addf %126, %151 : vector<16x8xf32>
    %153 = vector.extract_strided_slice %15 {offsets = [1, 0], sizes = [16, 4], strides = [1, 1]} : vector<18x4xf32> to vector<16x4xf32>
    %cst_97 = arith.constant dense<0.000000e+00> : vector<16x8xf32>
    %154 = tpu.matmul %153, %134, %cst_97 {dimension_numbers = #tpu.dot_dimension_numbers<[1], [0], [0], [1], [0, 0, 1, 1], [], []>} : vector<16x4xf32>, vector<4x8xf32>, vector<16x8xf32> -> vector<16x8xf32>
    %155 = arith.addf %129, %154 : vector<16x8xf32>
    %156 = vector.extract_strided_slice %17 {offsets = [1, 0], sizes = [16, 4], strides = [1, 1]} : vector<18x4xf32> to vector<16x4xf32>
    %cst_98 = arith.constant dense<0.000000e+00> : vector<16x8xf32>
    %157 = tpu.matmul %156, %134, %cst_98 {dimension_numbers = #tpu.dot_dimension_numbers<[1], [0], [0], [1], [0, 0, 1, 1], [], []>} : vector<16x4xf32>, vector<4x8xf32>, vector<16x8xf32> -> vector<16x8xf32>
    %158 = arith.addf %132, %157 : vector<16x8xf32>
    %c5 = arith.constant 5 : index
    %c0_99 = arith.constant 0 : index
    %c0_100 = arith.constant 0 : index
    %159 = vector.load %arg12[%c5, %c0_99, %c0_100] : memref<9x4x8xf32, #tpu.memory_space<vmem>>, vector<1x4x8xf32>
    %160 = vector.shape_cast %159 : vector<1x4x8xf32> to vector<4x8xf32>
    %161 = vector.extract_strided_slice %3 {offsets = [2, 0], sizes = [16, 4], strides = [1, 1]} : vector<18x4xf32> to vector<16x4xf32>
    %cst_101 = arith.constant dense<0.000000e+00> : vector<16x8xf32>
    %162 = tpu.matmul %161, %160, %cst_101 {dimension_numbers = #tpu.dot_dimension_numbers<[1], [0], [0], [1], [0, 0, 1, 1], [], []>} : vector<16x4xf32>, vector<4x8xf32>, vector<16x8xf32> -> vector<16x8xf32>
    %163 = arith.addf %137, %162 : vector<16x8xf32>
    %164 = vector.extract_strided_slice %5 {offsets = [2, 0], sizes = [16, 4], strides = [1, 1]} : vector<18x4xf32> to vector<16x4xf32>
    %cst_102 = arith.constant dense<0.000000e+00> : vector<16x8xf32>
    %165 = tpu.matmul %164, %160, %cst_102 {dimension_numbers = #tpu.dot_dimension_numbers<[1], [0], [0], [1], [0, 0, 1, 1], [], []>} : vector<16x4xf32>, vector<4x8xf32>, vector<16x8xf32> -> vector<16x8xf32>
    %166 = arith.addf %140, %165 : vector<16x8xf32>
    %167 = vector.extract_strided_slice %7 {offsets = [2, 0], sizes = [16, 4], strides = [1, 1]} : vector<18x4xf32> to vector<16x4xf32>
    %cst_103 = arith.constant dense<0.000000e+00> : vector<16x8xf32>
    %168 = tpu.matmul %167, %160, %cst_103 {dimension_numbers = #tpu.dot_dimension_numbers<[1], [0], [0], [1], [0, 0, 1, 1], [], []>} : vector<16x4xf32>, vector<4x8xf32>, vector<16x8xf32> -> vector<16x8xf32>
    %169 = arith.addf %143, %168 : vector<16x8xf32>
    %170 = vector.extract_strided_slice %9 {offsets = [2, 0], sizes = [16, 4], strides = [1, 1]} : vector<18x4xf32> to vector<16x4xf32>
    %cst_104 = arith.constant dense<0.000000e+00> : vector<16x8xf32>
    %171 = tpu.matmul %170, %160, %cst_104 {dimension_numbers = #tpu.dot_dimension_numbers<[1], [0], [0], [1], [0, 0, 1, 1], [], []>} : vector<16x4xf32>, vector<4x8xf32>, vector<16x8xf32> -> vector<16x8xf32>
    %172 = arith.addf %146, %171 : vector<16x8xf32>
    %173 = vector.extract_strided_slice %11 {offsets = [2, 0], sizes = [16, 4], strides = [1, 1]} : vector<18x4xf32> to vector<16x4xf32>
    %cst_105 = arith.constant dense<0.000000e+00> : vector<16x8xf32>
    %174 = tpu.matmul %173, %160, %cst_105 {dimension_numbers = #tpu.dot_dimension_numbers<[1], [0], [0], [1], [0, 0, 1, 1], [], []>} : vector<16x4xf32>, vector<4x8xf32>, vector<16x8xf32> -> vector<16x8xf32>
    %175 = arith.addf %149, %174 : vector<16x8xf32>
    %176 = vector.extract_strided_slice %13 {offsets = [2, 0], sizes = [16, 4], strides = [1, 1]} : vector<18x4xf32> to vector<16x4xf32>
    %cst_106 = arith.constant dense<0.000000e+00> : vector<16x8xf32>
    %177 = tpu.matmul %176, %160, %cst_106 {dimension_numbers = #tpu.dot_dimension_numbers<[1], [0], [0], [1], [0, 0, 1, 1], [], []>} : vector<16x4xf32>, vector<4x8xf32>, vector<16x8xf32> -> vector<16x8xf32>
    %178 = arith.addf %152, %177 : vector<16x8xf32>
    %179 = vector.extract_strided_slice %15 {offsets = [2, 0], sizes = [16, 4], strides = [1, 1]} : vector<18x4xf32> to vector<16x4xf32>
    %cst_107 = arith.constant dense<0.000000e+00> : vector<16x8xf32>
    %180 = tpu.matmul %179, %160, %cst_107 {dimension_numbers = #tpu.dot_dimension_numbers<[1], [0], [0], [1], [0, 0, 1, 1], [], []>} : vector<16x4xf32>, vector<4x8xf32>, vector<16x8xf32> -> vector<16x8xf32>
    %181 = arith.addf %155, %180 : vector<16x8xf32>
    %182 = vector.extract_strided_slice %17 {offsets = [2, 0], sizes = [16, 4], strides = [1, 1]} : vector<18x4xf32> to vector<16x4xf32>
    %cst_108 = arith.constant dense<0.000000e+00> : vector<16x8xf32>
    %183 = tpu.matmul %182, %160, %cst_108 {dimension_numbers = #tpu.dot_dimension_numbers<[1], [0], [0], [1], [0, 0, 1, 1], [], []>} : vector<16x4xf32>, vector<4x8xf32>, vector<16x8xf32> -> vector<16x8xf32>
    %184 = arith.addf %158, %183 : vector<16x8xf32>
    %c6 = arith.constant 6 : index
    %c0_109 = arith.constant 0 : index
    %c0_110 = arith.constant 0 : index
    %185 = vector.load %arg12[%c6, %c0_109, %c0_110] : memref<9x4x8xf32, #tpu.memory_space<vmem>>, vector<1x4x8xf32>
    %186 = vector.shape_cast %185 : vector<1x4x8xf32> to vector<4x8xf32>
    %187 = vector.extract_strided_slice %5 {offsets = [0, 0], sizes = [16, 4], strides = [1, 1]} : vector<18x4xf32> to vector<16x4xf32>
    %cst_111 = arith.constant dense<0.000000e+00> : vector<16x8xf32>
    %188 = tpu.matmul %187, %186, %cst_111 {dimension_numbers = #tpu.dot_dimension_numbers<[1], [0], [0], [1], [0, 0, 1, 1], [], []>} : vector<16x4xf32>, vector<4x8xf32>, vector<16x8xf32> -> vector<16x8xf32>
    %189 = arith.addf %163, %188 : vector<16x8xf32>
    %190 = vector.extract_strided_slice %7 {offsets = [0, 0], sizes = [16, 4], strides = [1, 1]} : vector<18x4xf32> to vector<16x4xf32>
    %cst_112 = arith.constant dense<0.000000e+00> : vector<16x8xf32>
    %191 = tpu.matmul %190, %186, %cst_112 {dimension_numbers = #tpu.dot_dimension_numbers<[1], [0], [0], [1], [0, 0, 1, 1], [], []>} : vector<16x4xf32>, vector<4x8xf32>, vector<16x8xf32> -> vector<16x8xf32>
    %192 = arith.addf %166, %191 : vector<16x8xf32>
    %193 = vector.extract_strided_slice %9 {offsets = [0, 0], sizes = [16, 4], strides = [1, 1]} : vector<18x4xf32> to vector<16x4xf32>
    %cst_113 = arith.constant dense<0.000000e+00> : vector<16x8xf32>
    %194 = tpu.matmul %193, %186, %cst_113 {dimension_numbers = #tpu.dot_dimension_numbers<[1], [0], [0], [1], [0, 0, 1, 1], [], []>} : vector<16x4xf32>, vector<4x8xf32>, vector<16x8xf32> -> vector<16x8xf32>
    %195 = arith.addf %169, %194 : vector<16x8xf32>
    %196 = vector.extract_strided_slice %11 {offsets = [0, 0], sizes = [16, 4], strides = [1, 1]} : vector<18x4xf32> to vector<16x4xf32>
    %cst_114 = arith.constant dense<0.000000e+00> : vector<16x8xf32>
    %197 = tpu.matmul %196, %186, %cst_114 {dimension_numbers = #tpu.dot_dimension_numbers<[1], [0], [0], [1], [0, 0, 1, 1], [], []>} : vector<16x4xf32>, vector<4x8xf32>, vector<16x8xf32> -> vector<16x8xf32>
    %198 = arith.addf %172, %197 : vector<16x8xf32>
    %199 = vector.extract_strided_slice %13 {offsets = [0, 0], sizes = [16, 4], strides = [1, 1]} : vector<18x4xf32> to vector<16x4xf32>
    %cst_115 = arith.constant dense<0.000000e+00> : vector<16x8xf32>
    %200 = tpu.matmul %199, %186, %cst_115 {dimension_numbers = #tpu.dot_dimension_numbers<[1], [0], [0], [1], [0, 0, 1, 1], [], []>} : vector<16x4xf32>, vector<4x8xf32>, vector<16x8xf32> -> vector<16x8xf32>
    %201 = arith.addf %175, %200 : vector<16x8xf32>
    %202 = vector.extract_strided_slice %15 {offsets = [0, 0], sizes = [16, 4], strides = [1, 1]} : vector<18x4xf32> to vector<16x4xf32>
    %cst_116 = arith.constant dense<0.000000e+00> : vector<16x8xf32>
    %203 = tpu.matmul %202, %186, %cst_116 {dimension_numbers = #tpu.dot_dimension_numbers<[1], [0], [0], [1], [0, 0, 1, 1], [], []>} : vector<16x4xf32>, vector<4x8xf32>, vector<16x8xf32> -> vector<16x8xf32>
    %204 = arith.addf %178, %203 : vector<16x8xf32>
    %205 = vector.extract_strided_slice %17 {offsets = [0, 0], sizes = [16, 4], strides = [1, 1]} : vector<18x4xf32> to vector<16x4xf32>
    %cst_117 = arith.constant dense<0.000000e+00> : vector<16x8xf32>
    %206 = tpu.matmul %205, %186, %cst_117 {dimension_numbers = #tpu.dot_dimension_numbers<[1], [0], [0], [1], [0, 0, 1, 1], [], []>} : vector<16x4xf32>, vector<4x8xf32>, vector<16x8xf32> -> vector<16x8xf32>
    %207 = arith.addf %181, %206 : vector<16x8xf32>
    %208 = vector.extract_strided_slice %19 {offsets = [0, 0], sizes = [16, 4], strides = [1, 1]} : vector<18x4xf32> to vector<16x4xf32>
    %cst_118 = arith.constant dense<0.000000e+00> : vector<16x8xf32>
    %209 = tpu.matmul %208, %186, %cst_118 {dimension_numbers = #tpu.dot_dimension_numbers<[1], [0], [0], [1], [0, 0, 1, 1], [], []>} : vector<16x4xf32>, vector<4x8xf32>, vector<16x8xf32> -> vector<16x8xf32>
    %210 = arith.addf %184, %209 : vector<16x8xf32>
    %c7 = arith.constant 7 : index
    %c0_119 = arith.constant 0 : index
    %c0_120 = arith.constant 0 : index
    %211 = vector.load %arg12[%c7, %c0_119, %c0_120] : memref<9x4x8xf32, #tpu.memory_space<vmem>>, vector<1x4x8xf32>
    %212 = vector.shape_cast %211 : vector<1x4x8xf32> to vector<4x8xf32>
    %213 = vector.extract_strided_slice %5 {offsets = [1, 0], sizes = [16, 4], strides = [1, 1]} : vector<18x4xf32> to vector<16x4xf32>
    %cst_121 = arith.constant dense<0.000000e+00> : vector<16x8xf32>
    %214 = tpu.matmul %213, %212, %cst_121 {dimension_numbers = #tpu.dot_dimension_numbers<[1], [0], [0], [1], [0, 0, 1, 1], [], []>} : vector<16x4xf32>, vector<4x8xf32>, vector<16x8xf32> -> vector<16x8xf32>
    %215 = arith.addf %189, %214 : vector<16x8xf32>
    %216 = vector.extract_strided_slice %7 {offsets = [1, 0], sizes = [16, 4], strides = [1, 1]} : vector<18x4xf32> to vector<16x4xf32>
    %cst_122 = arith.constant dense<0.000000e+00> : vector<16x8xf32>
    %217 = tpu.matmul %216, %212, %cst_122 {dimension_numbers = #tpu.dot_dimension_numbers<[1], [0], [0], [1], [0, 0, 1, 1], [], []>} : vector<16x4xf32>, vector<4x8xf32>, vector<16x8xf32> -> vector<16x8xf32>
    %218 = arith.addf %192, %217 : vector<16x8xf32>
    %219 = vector.extract_strided_slice %9 {offsets = [1, 0], sizes = [16, 4], strides = [1, 1]} : vector<18x4xf32> to vector<16x4xf32>
    %cst_123 = arith.constant dense<0.000000e+00> : vector<16x8xf32>
    %220 = tpu.matmul %219, %212, %cst_123 {dimension_numbers = #tpu.dot_dimension_numbers<[1], [0], [0], [1], [0, 0, 1, 1], [], []>} : vector<16x4xf32>, vector<4x8xf32>, vector<16x8xf32> -> vector<16x8xf32>
    %221 = arith.addf %195, %220 : vector<16x8xf32>
    %222 = vector.extract_strided_slice %11 {offsets = [1, 0], sizes = [16, 4], strides = [1, 1]} : vector<18x4xf32> to vector<16x4xf32>
    %cst_124 = arith.constant dense<0.000000e+00> : vector<16x8xf32>
    %223 = tpu.matmul %222, %212, %cst_124 {dimension_numbers = #tpu.dot_dimension_numbers<[1], [0], [0], [1], [0, 0, 1, 1], [], []>} : vector<16x4xf32>, vector<4x8xf32>, vector<16x8xf32> -> vector<16x8xf32>
    %224 = arith.addf %198, %223 : vector<16x8xf32>
    %225 = vector.extract_strided_slice %13 {offsets = [1, 0], sizes = [16, 4], strides = [1, 1]} : vector<18x4xf32> to vector<16x4xf32>
    %cst_125 = arith.constant dense<0.000000e+00> : vector<16x8xf32>
    %226 = tpu.matmul %225, %212, %cst_125 {dimension_numbers = #tpu.dot_dimension_numbers<[1], [0], [0], [1], [0, 0, 1, 1], [], []>} : vector<16x4xf32>, vector<4x8xf32>, vector<16x8xf32> -> vector<16x8xf32>
    %227 = arith.addf %201, %226 : vector<16x8xf32>
    %228 = vector.extract_strided_slice %15 {offsets = [1, 0], sizes = [16, 4], strides = [1, 1]} : vector<18x4xf32> to vector<16x4xf32>
    %cst_126 = arith.constant dense<0.000000e+00> : vector<16x8xf32>
    %229 = tpu.matmul %228, %212, %cst_126 {dimension_numbers = #tpu.dot_dimension_numbers<[1], [0], [0], [1], [0, 0, 1, 1], [], []>} : vector<16x4xf32>, vector<4x8xf32>, vector<16x8xf32> -> vector<16x8xf32>
    %230 = arith.addf %204, %229 : vector<16x8xf32>
    %231 = vector.extract_strided_slice %17 {offsets = [1, 0], sizes = [16, 4], strides = [1, 1]} : vector<18x4xf32> to vector<16x4xf32>
    %cst_127 = arith.constant dense<0.000000e+00> : vector<16x8xf32>
    %232 = tpu.matmul %231, %212, %cst_127 {dimension_numbers = #tpu.dot_dimension_numbers<[1], [0], [0], [1], [0, 0, 1, 1], [], []>} : vector<16x4xf32>, vector<4x8xf32>, vector<16x8xf32> -> vector<16x8xf32>
    %233 = arith.addf %207, %232 : vector<16x8xf32>
    %234 = vector.extract_strided_slice %19 {offsets = [1, 0], sizes = [16, 4], strides = [1, 1]} : vector<18x4xf32> to vector<16x4xf32>
    %cst_128 = arith.constant dense<0.000000e+00> : vector<16x8xf32>
    %235 = tpu.matmul %234, %212, %cst_128 {dimension_numbers = #tpu.dot_dimension_numbers<[1], [0], [0], [1], [0, 0, 1, 1], [], []>} : vector<16x4xf32>, vector<4x8xf32>, vector<16x8xf32> -> vector<16x8xf32>
    %236 = arith.addf %210, %235 : vector<16x8xf32>
    %c8 = arith.constant 8 : index
    %c0_129 = arith.constant 0 : index
    %c0_130 = arith.constant 0 : index
    %237 = vector.load %arg12[%c8, %c0_129, %c0_130] : memref<9x4x8xf32, #tpu.memory_space<vmem>>, vector<1x4x8xf32>
    %238 = vector.shape_cast %237 : vector<1x4x8xf32> to vector<4x8xf32>
    %239 = vector.extract_strided_slice %5 {offsets = [2, 0], sizes = [16, 4], strides = [1, 1]} : vector<18x4xf32> to vector<16x4xf32>
    %cst_131 = arith.constant dense<0.000000e+00> : vector<16x8xf32>
    %240 = tpu.matmul %239, %238, %cst_131 {dimension_numbers = #tpu.dot_dimension_numbers<[1], [0], [0], [1], [0, 0, 1, 1], [], []>} : vector<16x4xf32>, vector<4x8xf32>, vector<16x8xf32> -> vector<16x8xf32>
    %241 = arith.addf %215, %240 : vector<16x8xf32>
    %242 = vector.extract_strided_slice %7 {offsets = [2, 0], sizes = [16, 4], strides = [1, 1]} : vector<18x4xf32> to vector<16x4xf32>
    %cst_132 = arith.constant dense<0.000000e+00> : vector<16x8xf32>
    %243 = tpu.matmul %242, %238, %cst_132 {dimension_numbers = #tpu.dot_dimension_numbers<[1], [0], [0], [1], [0, 0, 1, 1], [], []>} : vector<16x4xf32>, vector<4x8xf32>, vector<16x8xf32> -> vector<16x8xf32>
    %244 = arith.addf %218, %243 : vector<16x8xf32>
    %245 = vector.extract_strided_slice %9 {offsets = [2, 0], sizes = [16, 4], strides = [1, 1]} : vector<18x4xf32> to vector<16x4xf32>
    %cst_133 = arith.constant dense<0.000000e+00> : vector<16x8xf32>
    %246 = tpu.matmul %245, %238, %cst_133 {dimension_numbers = #tpu.dot_dimension_numbers<[1], [0], [0], [1], [0, 0, 1, 1], [], []>} : vector<16x4xf32>, vector<4x8xf32>, vector<16x8xf32> -> vector<16x8xf32>
    %247 = arith.addf %221, %246 : vector<16x8xf32>
    %248 = vector.extract_strided_slice %11 {offsets = [2, 0], sizes = [16, 4], strides = [1, 1]} : vector<18x4xf32> to vector<16x4xf32>
    %cst_134 = arith.constant dense<0.000000e+00> : vector<16x8xf32>
    %249 = tpu.matmul %248, %238, %cst_134 {dimension_numbers = #tpu.dot_dimension_numbers<[1], [0], [0], [1], [0, 0, 1, 1], [], []>} : vector<16x4xf32>, vector<4x8xf32>, vector<16x8xf32> -> vector<16x8xf32>
    %250 = arith.addf %224, %249 : vector<16x8xf32>
    %251 = vector.extract_strided_slice %13 {offsets = [2, 0], sizes = [16, 4], strides = [1, 1]} : vector<18x4xf32> to vector<16x4xf32>
    %cst_135 = arith.constant dense<0.000000e+00> : vector<16x8xf32>
    %252 = tpu.matmul %251, %238, %cst_135 {dimension_numbers = #tpu.dot_dimension_numbers<[1], [0], [0], [1], [0, 0, 1, 1], [], []>} : vector<16x4xf32>, vector<4x8xf32>, vector<16x8xf32> -> vector<16x8xf32>
    %253 = arith.addf %227, %252 : vector<16x8xf32>
    %254 = vector.extract_strided_slice %15 {offsets = [2, 0], sizes = [16, 4], strides = [1, 1]} : vector<18x4xf32> to vector<16x4xf32>
    %cst_136 = arith.constant dense<0.000000e+00> : vector<16x8xf32>
    %255 = tpu.matmul %254, %238, %cst_136 {dimension_numbers = #tpu.dot_dimension_numbers<[1], [0], [0], [1], [0, 0, 1, 1], [], []>} : vector<16x4xf32>, vector<4x8xf32>, vector<16x8xf32> -> vector<16x8xf32>
    %256 = arith.addf %230, %255 : vector<16x8xf32>
    %257 = vector.extract_strided_slice %17 {offsets = [2, 0], sizes = [16, 4], strides = [1, 1]} : vector<18x4xf32> to vector<16x4xf32>
    %cst_137 = arith.constant dense<0.000000e+00> : vector<16x8xf32>
    %258 = tpu.matmul %257, %238, %cst_137 {dimension_numbers = #tpu.dot_dimension_numbers<[1], [0], [0], [1], [0, 0, 1, 1], [], []>} : vector<16x4xf32>, vector<4x8xf32>, vector<16x8xf32> -> vector<16x8xf32>
    %259 = arith.addf %233, %258 : vector<16x8xf32>
    %260 = vector.extract_strided_slice %19 {offsets = [2, 0], sizes = [16, 4], strides = [1, 1]} : vector<18x4xf32> to vector<16x4xf32>
    %cst_138 = arith.constant dense<0.000000e+00> : vector<16x8xf32>
    %261 = tpu.matmul %260, %238, %cst_138 {dimension_numbers = #tpu.dot_dimension_numbers<[1], [0], [0], [1], [0, 0, 1, 1], [], []>} : vector<16x4xf32>, vector<4x8xf32>, vector<16x8xf32> -> vector<16x8xf32>
    %262 = arith.addf %236, %261 : vector<16x8xf32>
    %263 = vector.broadcast %20 : vector<1x8xf32> to vector<16x8xf32>
    %264 = arith.addf %241, %263 : vector<16x8xf32>
    %c0_139 = arith.constant 0 : index
    %c0_140 = arith.constant 0 : index
    %c0_141 = arith.constant 0 : index
    %c0_142 = arith.constant 0 : index
    %265 = vector.load %arg14[%c0_139, %c0_140, %c0_141, %c0_142] : memref<1x8x16x8xf32, #tpu.memory_space<vmem>>, vector<1x1x16x8xf32>
    %266 = vector.shape_cast %265 : vector<1x1x16x8xf32> to vector<16x8xf32>
    %267 = vector.shape_cast %264 : vector<16x8xf32> to vector<1x1x16x8xf32>
    tpu.vector_store %arg14[%c0_139, %c0_140, %c0_141, %c0_142], %267 {strides = array<i32>} : memref<1x8x16x8xf32, #tpu.memory_space<vmem>>, vector<1x1x16x8xf32>,
    %268 = vector.broadcast %20 : vector<1x8xf32> to vector<16x8xf32>
    %269 = arith.addf %244, %268 : vector<16x8xf32>
    %c0_143 = arith.constant 0 : index
    %c1_144 = arith.constant 1 : index
    %c0_145 = arith.constant 0 : index
    %c0_146 = arith.constant 0 : index
    %270 = vector.load %arg14[%c0_143, %c1_144, %c0_145, %c0_146] : memref<1x8x16x8xf32, #tpu.memory_space<vmem>>, vector<1x1x16x8xf32>
    %271 = vector.shape_cast %270 : vector<1x1x16x8xf32> to vector<16x8xf32>
    %272 = vector.shape_cast %269 : vector<16x8xf32> to vector<1x1x16x8xf32>
    tpu.vector_store %arg14[%c0_143, %c1_144, %c0_145, %c0_146], %272 {strides = array<i32>} : memref<1x8x16x8xf32, #tpu.memory_space<vmem>>, vector<1x1x16x8xf32>,
    %273 = vector.broadcast %20 : vector<1x8xf32> to vector<16x8xf32>
    %274 = arith.addf %247, %273 : vector<16x8xf32>
    %c0_147 = arith.constant 0 : index
    %c2_148 = arith.constant 2 : index
    %c0_149 = arith.constant 0 : index
    %c0_150 = arith.constant 0 : index
    %275 = vector.load %arg14[%c0_147, %c2_148, %c0_149, %c0_150] : memref<1x8x16x8xf32, #tpu.memory_space<vmem>>, vector<1x1x16x8xf32>
    %276 = vector.shape_cast %275 : vector<1x1x16x8xf32> to vector<16x8xf32>
    %277 = vector.shape_cast %274 : vector<16x8xf32> to vector<1x1x16x8xf32>
    tpu.vector_store %arg14[%c0_147, %c2_148, %c0_149, %c0_150], %277 {strides = array<i32>} : memref<1x8x16x8xf32, #tpu.memory_space<vmem>>, vector<1x1x16x8xf32>,
    %278 = vector.broadcast %20 : vector<1x8xf32> to vector<16x8xf32>
    %279 = arith.addf %250, %278 : vector<16x8xf32>
    %c0_151 = arith.constant 0 : index
    %c3_152 = arith.constant 3 : index
    %c0_153 = arith.constant 0 : index
    %c0_154 = arith.constant 0 : index
    %280 = vector.load %arg14[%c0_151, %c3_152, %c0_153, %c0_154] : memref<1x8x16x8xf32, #tpu.memory_space<vmem>>, vector<1x1x16x8xf32>
    %281 = vector.shape_cast %280 : vector<1x1x16x8xf32> to vector<16x8xf32>
    %282 = vector.shape_cast %279 : vector<16x8xf32> to vector<1x1x16x8xf32>
    tpu.vector_store %arg14[%c0_151, %c3_152, %c0_153, %c0_154], %282 {strides = array<i32>} : memref<1x8x16x8xf32, #tpu.memory_space<vmem>>, vector<1x1x16x8xf32>,
    %283 = vector.broadcast %20 : vector<1x8xf32> to vector<16x8xf32>
    %284 = arith.addf %253, %283 : vector<16x8xf32>
    %c0_155 = arith.constant 0 : index
    %c4_156 = arith.constant 4 : index
    %c0_157 = arith.constant 0 : index
    %c0_158 = arith.constant 0 : index
    %285 = vector.load %arg14[%c0_155, %c4_156, %c0_157, %c0_158] : memref<1x8x16x8xf32, #tpu.memory_space<vmem>>, vector<1x1x16x8xf32>
    %286 = vector.shape_cast %285 : vector<1x1x16x8xf32> to vector<16x8xf32>
    %287 = vector.shape_cast %284 : vector<16x8xf32> to vector<1x1x16x8xf32>
    tpu.vector_store %arg14[%c0_155, %c4_156, %c0_157, %c0_158], %287 {strides = array<i32>} : memref<1x8x16x8xf32, #tpu.memory_space<vmem>>, vector<1x1x16x8xf32>,
    %288 = vector.broadcast %20 : vector<1x8xf32> to vector<16x8xf32>
    %289 = arith.addf %256, %288 : vector<16x8xf32>
    %c0_159 = arith.constant 0 : index
    %c5_160 = arith.constant 5 : index
    %c0_161 = arith.constant 0 : index
    %c0_162 = arith.constant 0 : index
    %290 = vector.load %arg14[%c0_159, %c5_160, %c0_161, %c0_162] : memref<1x8x16x8xf32, #tpu.memory_space<vmem>>, vector<1x1x16x8xf32>
    %291 = vector.shape_cast %290 : vector<1x1x16x8xf32> to vector<16x8xf32>
    %292 = vector.shape_cast %289 : vector<16x8xf32> to vector<1x1x16x8xf32>
    tpu.vector_store %arg14[%c0_159, %c5_160, %c0_161, %c0_162], %292 {strides = array<i32>} : memref<1x8x16x8xf32, #tpu.memory_space<vmem>>, vector<1x1x16x8xf32>,
    %293 = vector.broadcast %20 : vector<1x8xf32> to vector<16x8xf32>
    %294 = arith.addf %259, %293 : vector<16x8xf32>
    %c0_163 = arith.constant 0 : index
    %c6_164 = arith.constant 6 : index
    %c0_165 = arith.constant 0 : index
    %c0_166 = arith.constant 0 : index
    %295 = vector.load %arg14[%c0_163, %c6_164, %c0_165, %c0_166] : memref<1x8x16x8xf32, #tpu.memory_space<vmem>>, vector<1x1x16x8xf32>
    %296 = vector.shape_cast %295 : vector<1x1x16x8xf32> to vector<16x8xf32>
    %297 = vector.shape_cast %294 : vector<16x8xf32> to vector<1x1x16x8xf32>
    tpu.vector_store %arg14[%c0_163, %c6_164, %c0_165, %c0_166], %297 {strides = array<i32>} : memref<1x8x16x8xf32, #tpu.memory_space<vmem>>, vector<1x1x16x8xf32>,
    %298 = vector.broadcast %20 : vector<1x8xf32> to vector<16x8xf32>
    %299 = arith.addf %262, %298 : vector<16x8xf32>
    %c0_167 = arith.constant 0 : index
    %c7_168 = arith.constant 7 : index
    %c0_169 = arith.constant 0 : index
    %c0_170 = arith.constant 0 : index
    %300 = vector.load %arg14[%c0_167, %c7_168, %c0_169, %c0_170] : memref<1x8x16x8xf32, #tpu.memory_space<vmem>>, vector<1x1x16x8xf32>
    %301 = vector.shape_cast %300 : vector<1x1x16x8xf32> to vector<16x8xf32>
    %302 = vector.shape_cast %299 : vector<16x8xf32> to vector<1x1x16x8xf32>
    tpu.vector_store %arg14[%c0_167, %c7_168, %c0_169, %c0_170], %302 {strides = array<i32>} : memref<1x8x16x8xf32, #tpu.memory_space<vmem>>, vector<1x1x16x8xf32>,
    return
  }
  func.func @transform_0(%arg0: i32, %arg1: i32) -> (i32, i32, i32, i32) {
    %c8_i32 = arith.constant 8 : i32
    %0 = arith.muli %arg1, %c8_i32 : i32
    %c0_i32 = arith.constant 0 : i32
    %1 = arith.addi %0, %c0_i32 : i32
    %c0_i32_0 = arith.constant 0 : i32
    %c0_i32_1 = arith.constant 0 : i32
    %c0_i32_2 = arith.constant 0 : i32
    return %arg0, %1, %c0_i32_0, %c0_i32_1 : i32, i32, i32, i32
  }
  func.func @transform_1(%arg0: i32, %arg1: i32) -> (i32, i32, i32, i32) {
    %c8_i32 = arith.constant 8 : i32
    %0 = arith.muli %arg1, %c8_i32 : i32
    %c1_i32 = arith.constant 1 : i32
    %1 = arith.addi %0, %c1_i32 : i32
    %c0_i32 = arith.constant 0 : i32
    %c0_i32_0 = arith.constant 0 : i32
    %c0_i32_1 = arith.constant 0 : i32
    return %arg0, %1, %c0_i32, %c0_i32_0 : i32, i32, i32, i32
  }
  func.func @transform_2(%arg0: i32, %arg1: i32) -> (i32, i32, i32, i32) {
    %c8_i32 = arith.constant 8 : i32
    %0 = arith.muli %arg1, %c8_i32 : i32
    %c2_i32 = arith.constant 2 : i32
    %1 = arith.addi %0, %c2_i32 : i32
    %c0_i32 = arith.constant 0 : i32
    %c0_i32_0 = arith.constant 0 : i32
    %c0_i32_1 = arith.constant 0 : i32
    return %arg0, %1, %c0_i32, %c0_i32_0 : i32, i32, i32, i32
  }
  func.func @transform_3(%arg0: i32, %arg1: i32) -> (i32, i32, i32, i32) {
    %c8_i32 = arith.constant 8 : i32
    %0 = arith.muli %arg1, %c8_i32 : i32
    %c3_i32 = arith.constant 3 : i32
    %1 = arith.addi %0, %c3_i32 : i32
    %c0_i32 = arith.constant 0 : i32
    %c0_i32_0 = arith.constant 0 : i32
    %c0_i32_1 = arith.constant 0 : i32
    return %arg0, %1, %c0_i32, %c0_i32_0 : i32, i32, i32, i32
  }
  func.func @transform_4(%arg0: i32, %arg1: i32) -> (i32, i32, i32, i32) {
    %c8_i32 = arith.constant 8 : i32
    %0 = arith.muli %arg1, %c8_i32 : i32
    %c4_i32 = arith.constant 4 : i32
    %1 = arith.addi %0, %c4_i32 : i32
    %c0_i32 = arith.constant 0 : i32
    %c0_i32_0 = arith.constant 0 : i32
    %c0_i32_1 = arith.constant 0 : i32
    return %arg0, %1, %c0_i32, %c0_i32_0 : i32, i32, i32, i32
  }
  func.func @transform_5(%arg0: i32, %arg1: i32) -> (i32, i32, i32, i32) {
    %c8_i32 = arith.constant 8 : i32
    %0 = arith.muli %arg1, %c8_i32 : i32
    %c5_i32 = arith.constant 5 : i32
    %1 = arith.addi %0, %c5_i32 : i32
    %c0_i32 = arith.constant 0 : i32
    %c0_i32_0 = arith.constant 0 : i32
    %c0_i32_1 = arith.constant 0 : i32
    return %arg0, %1, %c0_i32, %c0_i32_0 : i32, i32, i32, i32
  }
  func.func @transform_6(%arg0: i32, %arg1: i32) -> (i32, i32, i32, i32) {
    %c8_i32 = arith.constant 8 : i32
    %0 = arith.muli %arg1, %c8_i32 : i32
    %c6_i32 = arith.constant 6 : i32
    %1 = arith.addi %0, %c6_i32 : i32
    %c0_i32 = arith.constant 0 : i32
    %c0_i32_0 = arith.constant 0 : i32
    %c0_i32_1 = arith.constant 0 : i32
    return %arg0, %1, %c0_i32, %c0_i32_0 : i32, i32, i32, i32
  }
  func.func @transform_7(%arg0: i32, %arg1: i32) -> (i32, i32, i32, i32) {
    %c8_i32 = arith.constant 8 : i32
    %0 = arith.muli %arg1, %c8_i32 : i32
    %c7_i32 = arith.constant 7 : i32
    %1 = arith.addi %0, %c7_i32 : i32
    %c0_i32 = arith.constant 0 : i32
    %c0_i32_0 = arith.constant 0 : i32
    %c0_i32_1 = arith.constant 0 : i32
    return %arg0, %1, %c0_i32, %c0_i32_0 : i32, i32, i32, i32
  }
  func.func @transform_8(%arg0: i32, %arg1: i32) -> (i32, i32, i32, i32) {
    %c8_i32 = arith.constant 8 : i32
    %0 = arith.muli %arg1, %c8_i32 : i32
    %c8_i32_0 = arith.constant 8 : i32
    %1 = arith.addi %0, %c8_i32_0 : i32
    %c0_i32 = arith.constant 0 : i32
    %c0_i32_1 = arith.constant 0 : i32
    %c0_i32_2 = arith.constant 0 : i32
    return %arg0, %1, %c0_i32, %c0_i32_1 : i32, i32, i32, i32
  }
  func.func @transform_9(%arg0: i32, %arg1: i32) -> (i32, i32, i32, i32) {
    %c8_i32 = arith.constant 8 : i32
    %0 = arith.muli %arg1, %c8_i32 : i32
    %c9_i32 = arith.constant 9 : i32
    %1 = arith.addi %0, %c9_i32 : i32
    %c0_i32 = arith.constant 0 : i32
    %c0_i32_0 = arith.constant 0 : i32
    %c0_i32_1 = arith.constant 0 : i32
    return %arg0, %1, %c0_i32, %c0_i32_0 : i32, i32, i32, i32
  }
  func.func @transform_10(%arg0: i32, %arg1: i32) -> (i32, i32, i32) {
    %c0_i32 = arith.constant 0 : i32
    %c0_i32_0 = arith.constant 0 : i32
    %c0_i32_1 = arith.constant 0 : i32
    %c0_i32_2 = arith.constant 0 : i32
    return %c0_i32, %c0_i32_0, %c0_i32_1 : i32, i32, i32
  }
  func.func @transform_11(%arg0: i32, %arg1: i32) -> (i32, i32) {
    %c0_i32 = arith.constant 0 : i32
    %c0_i32_0 = arith.constant 0 : i32
    %c0_i32_1 = arith.constant 0 : i32
    return %c0_i32, %c0_i32_0 : i32, i32
  }
  func.func @transform_12(%arg0: i32, %arg1: i32) -> (i32, i32, i32, i32) {
    %c0_i32 = arith.constant 0 : i32
    %c0_i32_0 = arith.constant 0 : i32
    %c0_i32_1 = arith.constant 0 : i32
    return %arg0, %arg1, %c0_i32, %c0_i32_0 : i32, i32, i32, i32
  }
}

</mosaic_0001>

<bundles_post_ra>
// kernel: spectral_norm_conv2d_forward.2
= control target key start
LH: loop header
LB: loop body
LE: loop exit
PB: predicated region body
PF: predicated region fallthrough
CT: control target
= control target key end

     0   :  { %11 = vsyncpa [#allocation3], 0  ;;  %s325_s0 = inlined_call_operand.vmem [shape: f32[8,36], index: 0, kind: input, shape index: {}]   ;;  %s326_s1 = inlined_call_operand.vmem [shape: f32[8,1], index: 1, kind: input, shape index: {}]   ;;  %s327_s2 = inlined_call_operand.vmem [shape: f32[8,1], index: 2, kind: output, shape index: {0}]   ;;  %s328_s3 = inlined_call_operand.hbm [shape: f32[1,36], index: 3, kind: output, shape index: {1}]   ;;  %s329_s4 = inlined_call_operand.hbm [shape: f32[1,1], index: 4, kind: output, shape index: {2}]   ;;  %s330_s5 = inlined_call_operand.hbm [shape: f32[1,1], index: 5, kind: output, shape index: {3}]  }
   0x1   :  { %v18_v0 = vld [vmem:[%s326_s1] sm:$0xff] }
   0x2   :  { %12 = vsyncpa [#allocation5], 0  ;;  %v237_v1 = vmov 0   ;;  %v17_v2 = vld [vmem:[%s325_s0] sm:$0xff]  ;;  %vm25_vm0 = vcmask 293888   ;;  %vm34_vm1 = vcmask 286720  }
   0x3   :  { %156 = vset.pattern.permute.xlu0 %v237_v1  ;;  %vm61_vm4 = vcmask 7168   ;;  %s238_s24 = smov [#allocation2]  }
   0x4   :  { %21 = vperm.xlu0 %156, %v18_v0   ;;  %s109_s25 = sshll.u32 %s238_s24, 4  ;;  %s110_s25 = int_to_ptr.vmem [resolvable:$true] %s109_s25 }
   0x5   :  { %s167_s26 = scalar_lea.vmem %s110_s25, 16  ;;  %s171_s27 = scalar_lea.vmem %s110_s25, 32 }
   0x6   :  { %p168_p0 = scmp.ne.s32.totalorder %s110_s25, %s167_s26  ;;  %p172_p1 = scmp.lt.s32.totalorder %s110_s25, %s110_s25 }
   0x7   :  { %p173_p2 = scmp.lt.s32.totalorder %s171_s27, %s167_s26 }
   0x9   :  { %p174_p3 = por %p173_p2, %p172_p1 }
   0xb   :  { %p175_p4 = pnand %p174_p3, %p168_p0 }
  0x83   :  { %v22_v3 = vpop.permute.xlu0 %21 }
  0x84   :  { %v24_v4 = vmul.f32 %v22_v3, %v17_v2 }
  0x86   :  { %v26_v5 = vsel %vm25_vm0, %v24_v4, 0.0 }
  0x87   :  { %v27_v6 = vrot.slane %v26_v5, 4 }
  0x89   :  { %v28_v7 = vadd.f32 %v27_v6, %v26_v5 }
  0x8b   :  { %v29_v8 = vrot.slane %v28_v7, 2 }
  0x8d   :  { %v30_v9 = vadd.f32 %v29_v8, %v28_v7 }
  0x8f   :  { %v31_v10 = vrot.slane %v30_v9, 1 }
  0x91   :  { %v32_v11 = vadd.f32 %v31_v10, %v30_v9 }
  0x93   :  { %v33_v12 = vmul.f32 %v32_v11, %v32_v11 }
  0x95   :  { %v35_v13 = vsel %vm34_vm1, %v33_v12, 0.0 }
  0x96   :  { %36 = vadd.xlane.f32.xlu0 %v35_v13 }
 0x123   :  { %v37_v14 = vpop.xlane.xlu0 %36 }
 0x124   :  { %v38_v15 = vrot.slane %v37_v14, 4 }
 0x126   :  { %v39_v16 = vadd.f32 %v38_v15, %v37_v14 }
 0x128   :  { %v40_v17 = vrot.slane %v39_v16, 2 }
 0x12a   :  { %v41_v18 = vadd.f32 %v40_v17, %v39_v16 }
 0x12c   :  { %v42_v19 = vrot.slane %v41_v18, 1 }
 0x12e   :  { %v43_v20 = vadd.f32 %v42_v19, %v41_v18 }
 0x130   :  { %146 = vpush %v43_v20 }
 0x161   :  { %s147_s0 = spop %146 }
 0x162   :  { %v45_v21 = vstv %s147_s0 }
 0x163   :  { %157 = vrsqrt.f32 %v45_v21  ;;  %vm48_vm2 = vcmp.eq.f32.partialorder %v45_v21, inf  ;;  %v51_v24 = vand.u32 2147483648, %v45_v21  ;;  %vm50_vm3 = vcmp.eq.f32.partialorder %v45_v21, 0.0 }
 0x16d   :  { %v158_v22 = vpop.eup %157 }
 0x16e   :  { %v47_v23 = vmul.f32 %v158_v22, %v45_v21 }
 0x170   :  { %v49_v25 = vsel %vm48_vm2, %v45_v21, %v47_v23 }
 0x171   :  { %v52_v26 = vsel %vm50_vm3, %v51_v24, %v49_v25 }
 0x172   :  { %v53_v27 = vadd.f32 1e-12, %v52_v26 }
 0x174   :  { %159 = vrcp.f32 %v53_v27 }
 0x17e   :  { %v160_v28 = vpop.eup %159 }
 0x17f   :  { %v55_v29 = vmul.f32 %v160_v28, %v32_v11 }
 0x181   :  { %v56_v30 = vmul.f32 %v55_v29, %v17_v2  ;;  %96 = vst.msk [vmem:[#allocation2] sm:$0x1] %vm34_vm1, %v55_v29 }
 0x183   :  { %v57_v31 = vsel %vm25_vm0, %v56_v30, 0.0 }
 0x184   :  { %58 = vadd.xlane.f32.xlu1 %v57_v31 }
 0x211   :  { %v59_v32 = vpop.xlane.xlu1 %58 }
 0x212   :  { %v60_v33 = vmul.f32 %v59_v32, %v59_v32 }
 0x214   :  { %v62_v34 = vsel %vm61_vm4, %v60_v33, 0.0 }
 0x215   :  { %63 = vadd.xlane.f32.xlu1 %v62_v34 }
 0x2a2   :  { %v64_v35 = vpop.xlane.xlu1 %63 }
 0x2a3   :  { %v65_v36 = vrot.slane %v64_v35, 4 }
 0x2a5   :  { %v66_v37 = vadd.f32 %v65_v36, %v64_v35 }
 0x2a7   :  { %v67_v38 = vrot.slane %v66_v37, 2 }
 0x2a9   :  { %v68_v39 = vadd.f32 %v67_v38, %v66_v37 }
 0x2ab   :  { %v69_v40 = vrot.slane %v68_v39, 1 }
 0x2ad   :  { %v70_v41 = vadd.f32 %v69_v40, %v68_v39 }
 0x2af   :  { %148 = vpush %v70_v41 }
 0x2e0   :  { %s149_s1 = spop %148 }
 0x2e1   :  { %v72_v42 = vstv %s149_s1 }
 0x2e2   :  { %161 = vrsqrt.f32 %v72_v42  ;;  %vm75_vm5 = vcmp.eq.f32.partialorder %v72_v42, inf  ;;  %v78_v45 = vand.u32 2147483648, %v72_v42  ;;  %vm77_vm6 = vcmp.eq.f32.partialorder %v72_v42, 0.0 }
 0x2ec   :  { %v162_v43 = vpop.eup %161 }
 0x2ed   :  { %v74_v44 = vmul.f32 %v162_v43, %v72_v42 }
 0x2ef   :  { %v76_v46 = vsel %vm75_vm5, %v72_v42, %v74_v44 }
 0x2f0   :  { %v79_v47 = vsel %vm77_vm6, %v78_v45, %v76_v46 }
 0x2f1   :  { %v80_v48 = vadd.f32 1e-12, %v79_v47 }
 0x2f3   :  { %163 = vrcp.f32 %v80_v48 }
 0x2fd   :  { %v164_v49 = vpop.eup %163 }
 0x2fe   :  { %v82_v50 = vmul.f32 %v164_v49, %v59_v32 }
 0x300   :  { %v83_v51 = vmul.f32 %v82_v50, %v59_v32  ;;  %95 = vst.msk [vmem:[%s327_s2] sm:$0xff] %vm61_vm4, %v82_v50 }
 0x302   :  { %v84_v52 = vsel %vm61_vm4, %v83_v51, 0.0 }
 0x303   :  { %85 = vadd.xlane.f32.xlu1 %v84_v52 }
 0x304   :  { %178 = shalt.err (!%p175_p4)
}
 0x305   :  { %s179_s30 = scalar_lea.hbm %s328_s3, 16 }
 0x306   :  { %p180_p5 = scmp.ne.s32.totalorder %s328_s3, %s179_s30  ;;  %p183_p6 = scmp.lt.u32.totalorder %s179_s30, %s328_s3 }
 0x308   :  { %p185_p7 = pnand %p183_p6, %p180_p5 }
 0x30a   :  { %188 = shalt.err (!%p185_p7)
}
 0x30b   :  { %112 = dma.vmem_to_hbm [thread:$0]  %s110_s25, 16, %s328_s3, [#allocation3]   ;;  %vm97_vm7 = vcmask 0  }
 0x30c   :  { %s239_s11 = smov [#allocation4]  }
 0x30d   :  { %s119_s12 = sshll.u32 %s239_s11, 4  ;;  %s120_s12 = int_to_ptr.vmem [resolvable:$true] %s119_s12 }
 0x30e   :  { %s189_s14 = scalar_lea.vmem %s120_s12, 16  ;;  %s193_s3 = scalar_lea.vmem %s120_s12, 32 }
 0x30f   :  { %p190_p8 = scmp.ne.s32.totalorder %s120_s12, %s189_s14  ;;  %p194_p9 = scmp.lt.s32.totalorder %s120_s12, %s120_s12 }
 0x310   :  { %p195_p10 = scmp.lt.s32.totalorder %s193_s3, %s189_s14 }
 0x312   :  { %p196_p11 = por %p195_p10, %p194_p9 }
 0x314   :  { %p197_p12 = pnand %p196_p11, %p190_p8 }
 0x390   :  { %v86_v53 = vpop.xlane.xlu1 %85 }
 0x391   :  { %v87_v54 = vrot.slane %v86_v53, 4 }
 0x393   :  { %v88_v55 = vadd.f32 %v87_v54, %v86_v53 }
 0x395   :  { %v89_v56 = vrot.slane %v88_v55, 2 }
 0x397   :  { %v90_v57 = vadd.f32 %v89_v56, %v88_v55 }
 0x399   :  { %v91_v58 = vrot.slane %v90_v57, 1 }
 0x39b   :  { %v92_v59 = vadd.f32 %v91_v58, %v90_v57 }
 0x39d   :  { %150 = vpush %v92_v59 }
 0x3ce   :  { %s151_s13 = spop %150 }
 0x3cf   :  { %v94_v60 = vstv %s151_s13 }
 0x3d0   :  { %98 = vst.msk [vmem:[#allocation4] sm:$0x1] %vm97_vm7, %v94_v60  ;;  %165 = vrcp.f32 %v94_v60 }
 0x3d1   :  { %200 = shalt.err (!%p197_p12)
}
 0x3d2   :  { %s201_s17 = scalar_lea.hbm %s329_s4, 16 }
 0x3d3   :  { %p202_p13 = scmp.ne.s32.totalorder %s329_s4, %s201_s17  ;;  %p205_p0 = scmp.lt.u32.totalorder %s201_s17, %s329_s4 }
 0x3d5   :  { %p207_p1 = pnand %p205_p0, %p202_p13 }
 0x3d7   :  { %210 = shalt.err (!%p207_p1)
}
 0x3d8   :  { %122 = dma.vmem_to_hbm [thread:$0]  %s120_s12, 16, %s329_s4, [#allocation5]  }
 0x3d9   :  { %s240_s22 = smov [#allocation6]  }
 0x3da   :  { %s129_s23 = sshll.u32 %s240_s22, 4  ;;  %v166_v61 = vpop.eup %165  ;;  %s130_s23 = int_to_ptr.vmem [resolvable:$true] %s129_s23 }
 0x3db   :  { %100 = vst.msk [vmem:[#allocation6] sm:$0x1] %vm97_vm7, %v166_v61  ;;  %s211_s24 = scalar_lea.vmem %s130_s23, 16  ;;  %s215_s25 = scalar_lea.vmem %s130_s23, 32 }
 0x3dc   :  { %p212_p2 = scmp.ne.s32.totalorder %s130_s23, %s211_s24  ;;  %p216_p3 = scmp.lt.s32.totalorder %s130_s23, %s130_s23 }
 0x3dd   :  { %p217_p4 = scmp.lt.s32.totalorder %s215_s25, %s211_s24 }
 0x3df   :  { %p218_p5 = por %p217_p4, %p216_p3 }
 0x3e1   :  { %p219_p6 = pnand %p218_p5, %p212_p2 }
 0x3e3   :  { %222 = shalt.err (!%p219_p6)
}
 0x3e4   :  { %s223_s28 = scalar_lea.hbm %s330_s5, 16 }
 0x3e5   :  { %p224_p7 = scmp.ne.s32.totalorder %s330_s5, %s223_s28  ;;  %p227_p8 = scmp.lt.u32.totalorder %s223_s28, %s330_s5 }
 0x3e7   :  { %p229_p9 = pnand %p227_p8, %p224_p7 }
 0x3e9   :  { %232 = shalt.err (!%p229_p9)
}
 0x3ea   :  { %132 = dma.vmem_to_hbm [thread:$0]  %s130_s23, 16, %s330_s5, [#allocation5]  }
 0x3eb   :  { %233 = dma.done.wait [#allocation3], 16  }
 0x3ec   :  { %234 = vsyncadd [#allocation3], 4294967280 }
 0x3ed   :  { %235 = dma.done.wait [#allocation5], 32  }
 0x3ee   :  { %236 = vsyncadd [#allocation5], 4294967264 }
 0x3ef   :  { %144 = vsyncpa [#allocation3], 1 }
 0x3f0   :  { %145 = vsyncpa [#allocation5], 1 }

// kernel: spectral_norm_conv2d_forward.3
= control target key start
LH: loop header
LB: loop body
LE: loop exit
PB: predicated region body
PF: predicated region fallthrough
CT: control target
= control target key end

     0   :  { %s8217_s21 = smov 0   ;;  %s8219_s22 = smov 0   ;;  %s9148_s0 = inlined_call_operand.vmem [shape: f32[2,18,18,4], index: 0, kind: input, shape index: {}, may-alias: {0,1,2,3,4,5,6,7,8,9}]   ;;  %s9149_s1 = inlined_call_operand.vmem [shape: f32[2,18,18,4], index: 1, kind: input, shape index: {}, may-alias: {0,1,2,3,4,5,6,7,8,9}]   ;;  %s9150_s2 = inlined_call_operand.vmem [shape: f32[2,18,18,4], index: 2, kind: input, shape index: {}, may-alias: {0,1,2,3,4,5,6,7,8,9}]   ;;  %s9151_s3 = inlined_call_operand.vmem [shape: f32[2,18,18,4], index: 3, kind: input, shape index: {}, may-alias: {0,1,2,3,4,5,6,7,8,9}]   ;;  %s9152_s4 = inlined_call_operand.vmem [shape: f32[2,18,18,4], index: 4, kind: input, shape index: {}, may-alias: {0,1,2,3,4,5,6,7,8,9}]   ;;  %s9153_s5 = inlined_call_operand.vmem [shape: f32[2,18,18,4], index: 5, kind: input, shape index: {}, may-alias: {0,1,2,3,4,5,6,7,8,9}]   ;;  %s9154_s6 = inlined_call_operand.vmem [shape: f32[2,18,18,4], index: 6, kind: input, shape index: {}, may-alias: {0,1,2,3,4,5,6,7,8,9}]   ;;  %s9155_s7 = inlined_call_operand.vmem [shape: f32[2,18,18,4], index: 7, kind: input, shape index: {}, may-alias: {0,1,2,3,4,5,6,7,8,9}]   ;;  %s9156_s8 = inlined_call_operand.vmem [shape: f32[2,18,18,4], index: 8, kind: input, shape index: {}, may-alias: {0,1,2,3,4,5,6,7,8,9}]   ;;  %s9157_s9 = inlined_call_operand.vmem [shape: f32[2,18,18,4], index: 9, kind: input, shape index: {}, may-alias: {0,1,2,3,4,5,6,7,8,9}]   ;;  %s9158_s10 = inlined_call_operand.vmem [shape: f32[9,4,8], index: 10, kind: input, shape index: {}]   ;;  %s9159_s11 = inlined_call_operand.vmem [shape: f32[1,8], index: 11, kind: input, shape index: {}]   ;;  %s9160_s12 = inlined_call_operand.vmem [shape: f32[2,16,16,8], index: 12, kind: output, shape index: {}]  }
   0x1   :  { %s8221_s23 = smov 0   ;;  %s8223_s24 = smov 0  }
   0x2   :  { %s8225_s25 = smov 0  }
   0x3 LB: > { %9162 = sst [smem:[#allocation2_spill]] %s8146_s24  ;;  %s31_s26 = sadd.s32 1, %s8142_s23  ;;  %s8150_s25 = sphi %s8225_s25, %s22_s25   ;;  %s8146_s24 = sphi %s8223_s24, %s9176_s24   ;;  %s8142_s23 = sphi %s8221_s23, %s9175_s23   ;;  %s8138_s22 = sphi %s8219_s22, %s9171_s22   ;;  %s8134_s21 = sphi %s8217_s21, %s9174_s21  }
   0x4   : > { %s34_s27 = sadd.s32 1, %s8146_s24  ;;  %p32_p0 = scmp.ge.s32.totalorder %s31_s26, 2 }
   0x5   : > { %p7091_p1 = scmp.ge.s32.totalorder %s8150_s25, 1  ;;  %p602_p2 = scmp.lt.s32.totalorder %s8150_s25, 5 }
   0x6   : > { %s9178_s26 = smov (%p32_p0, %s31_s26), 0  ;;  %s9180_s27 = smov (!%p32_p0, %s34_s27), %s8146_s24 }
   0x7   : > { %9163 = sst [smem:[#allocation3_spill]] %s9178_s26  ;;  %p603_p3 = pnand %p7091_p1, %p602_p2 }
   0x8   : > { %p36_p4 = scmp.ge.s32.totalorder %s9180_s27, 2  ;;  %v8250_v0 = vld [vmem:[%s9158_s10 + $0x4] sm:$0xf] (!%p603_p3)  ;;  %vm940_vm0 = vcmask (!%p603_p3), 1043456   ;;  %s8252_s30 = sshll.u32 (!%p603_p3), %s8134_s21, 3  ;;  %vm929_vm1 = vcmask (!%p603_p3), 1046528  }
   0x9   : > { %606 = sbr.rel (%p603_p3) target bundleno = 407 (0x197), region = 68  ;;  %p754_p5 = scmp.lt.s32.totalorder (!%p603_p3), %s8138_s22, 1  ;;  %7573 = vmatprep.subr.msk.mxu0 (!%p603_p3), %vm940_vm0, %v8250_v0  ;;  %7583 = vmatprep.subr.msk.mxu1 (!%p603_p3), %vm940_vm0, %v8250_v0  ;;  %v8263_v1 = vld [vmem:[%s9158_s10] sm:$0xf] (!%p603_p3)  ;;  %vm935_vm2 = vcmask (!%p603_p3), 31744   ;;  %vm2265_vm3 = vcmask (!%p603_p3), 1045504  }
   0xa   : > { %s9182_s27 = smov (%p36_p4, %s9180_s27), 0  ;;  %p756_p6 = scmp.lt.s32.totalorder (!%p603_p3), %s8252_s30, 17  ;;  %7574 = vmatpush3.msk.msra.mxu0 (!%p603_p3), %vm940_vm0, %v8250_v0  ;;  %7584 = vmatpush3.msk.msra.mxu1 (!%p603_p3), %vm940_vm0, %v8250_v0  ;;  %vm6741_vm4 = vcmask (!%p603_p3), 64512  }
   0xb   : > { %9164 = sst [smem:[#allocation4_spill]] %s9182_s27  ;;  %p884_p7 = scmp.lt.s32.totalorder (!%p603_p3), %s8252_s30, 15  ;;  %7578 = vmatprep.subr.msk.mxu0 (!%p603_p3), %vm940_vm0, %v8263_v1  ;;  %7588 = vmatprep.subr.msk.mxu1 (!%p603_p3), %vm940_vm0, %v8263_v1 }
   0xc   : > { %s765_s19 = sadd.s32 (!%p603_p3), 1, %s8252_s30  ;;  %s791_s27 = sadd.s32 (!%p603_p3), 3, %s8252_s30 }
   0xd   : > { %p8279_p8 = scmp.lt.s32.totalorder (!%p603_p3), %s765_s19, 17  ;;  %p8305_p10 = scmp.lt.s32.totalorder (!%p603_p3), %s791_s27, 17 }
   0xe   : > { %s830_s28 = sadd.s32 (!%p603_p3), 6, %s8252_s30 }
   0xf   : > { %p833_p13 = scmp.lt.s32.totalorder (!%p603_p3), %s830_s28, 17 }
  0x10   : > { %s9184_s22 = smov (!%p754_p5, %s8138_s22), 1  ;;  %s9186_s19 = smov (!%p8279_p8, %s765_s19), 17 }
  0x11   : > { %s757_s15 = scalar_select %p756_p6, %s8252_s30, 17 }
  0x12   : > { %s8274_s16 = smul.u32 54, %s9184_s22  ;;  %s7114_s17 = sshll.u32 %s9184_s22, 5 }
  0x13   : > { %s8061_s18 = smul.u32 3, %s757_s15  ;;  %s778_s22 = sadd.s32 2, %s8252_s30 }
  0x14   : > { %s885_s20 = scalar_select %p884_p7, %s8252_s30, 15 }
  0x15   : > { %s760_s21 = sadd.s32 %s8274_s16, %s8061_s18  ;;  %p781_p9 = scmp.lt.s32.totalorder %s778_s22, 17 }
  0x16   : > { %s7093_s29 = sshll.u32 %s760_s21, 3  ;;  %s7113_s13 = sshll.u32 %s885_s20, 1 }
  0x17   : > { %s762_s26 = scalar_lea.vmem %s9148_s0, %s7093_s29  ;;  %s8286_s24 = sadd.s32 %s7114_s17, %s7113_s13 }
  0x18   : > { %v8288_v2 = vld [vmem:[%s762_s26] sm:$0xff]  ;;  %v8290_v3 = vld [vmem:[%s762_s26 + $0x8] sm:$0xff]  ;;  %v8292_v4 = vld [vmem:[%s762_s26 + $0x10] sm:$0x3]  ;;  %s9188_s22 = smov (!%p781_p9, %s778_s22), 17  ;;  %s8063_s26 = smul.u32 3, %s9186_s19 }
  0x19   : > { %v930_v5 = vrot.slane %v8288_v2, 1  ;;  %v931_v6 = vrot.slane %v8290_v3, 1  ;;  %v933_v7 = vrot.slane %v8292_v4, 1  ;;  %s8064_s15 = smul.u32 3, %s9188_s22  ;;  %s804_s20 = sadd.s32 4, %s8252_s30 }
  0x1a   : > { %s772_s18 = sadd.s32 %s8063_s26, %s8274_s16  ;;  %p807_p11 = scmp.lt.s32.totalorder %s804_s20, 17 }
  0x1b   : > { %v932_v8 = vsel %vm929_vm1, %v930_v5, %v931_v6  ;;  %v934_v9 = vsel %vm929_vm1, %v931_v6, %v933_v7  ;;  %s7095_s21 = sshll.u32 %s772_s18, 3  ;;  %s785_s19 = sadd.s32 %s8064_s15, %s8274_s16 }
  0x1c   : > { %7575 = vmatprep.mubr.msk.f32.mxu0 %vm935_vm2, %v932_v8  ;;  %s774_s13 = scalar_lea.vmem %s9149_s1, %s7095_s21  ;;  %s7097_s14 = sshll.u32 %s785_s19, 3 }
  0x1d   : > { %7576 = vmatmul.mubr.msk.f32.vlgmr.msra.gmra.mrb[0].mxu0 %vm935_vm2, %v934_v9  ;;  %v8321_v10 = vld [vmem:[%s774_s13] sm:$0xff]  ;;  %v8323_v11 = vld [vmem:[%s774_s13 + $0x8] sm:$0xff]  ;;  %v8325_v12 = vld [vmem:[%s774_s13 + $0x10] sm:$0x3]  ;;  %s787_s18 = scalar_lea.vmem %s9150_s2, %s7097_s14  ;;  %s9190_s27 = smov (!%p8305_p10, %s791_s27), 17 }
  0x1e   : > { %7579 = vmatpush3.msk.msra.mxu0 %vm940_vm0, %v8263_v1  ;;  %7580 = vmatprep.mubr.msk.f32.mxu0 %vm935_vm2, %v8288_v2  ;;  %v1104_v13 = vrot.slane %v8321_v10, 1  ;;  %v1105_v14 = vrot.slane %v8323_v11, 1  ;;  %v1107_v15 = vrot.slane %v8325_v12, 1  ;;  %v8333_v16 = vld [vmem:[%s787_s18] sm:$0xff]  ;;  %v8335_v17 = vld [vmem:[%s787_s18 + $0x8] sm:$0xff]  ;;  %s9192_s20 = smov (!%p807_p11, %s804_s20), 17 }
  0x1f   : > { %7593 = vmatprep.subr.msk.mxu0 %vm940_vm0, %v8250_v0  ;;  %v1270_v18 = vrot.slane %v8333_v16, 1  ;;  %v1271_v19 = vrot.slane %v8335_v17, 1  ;;  %v8339_v20 = vld [vmem:[%s787_s18 + $0x10] sm:$0x3]  ;;  %s8065_s15 = smul.u32 3, %s9190_s27  ;;  %s817_s17 = sadd.s32 5, %s8252_s30 }
  0x20   : > { %v8344_v21 = vsel %vm929_vm1, %v1104_v13, %v1105_v14  ;;  %v8347_v22 = vsel %vm929_vm1, %v1105_v14, %v1107_v15  ;;  %v1273_v23 = vrot.slane %v8339_v20, 1  ;;  %s8066_s21 = smul.u32 3, %s9192_s20  ;;  %p8367_p12 = scmp.lt.s32.totalorder %s817_s17, 17 }
  0x21   : > { %7585 = vmatprep.mubr.msk.f32.mxu1 %vm935_vm2, %v8344_v21  ;;  %v8355_v24 = vsel %vm929_vm1, %v1270_v18, %v1271_v19  ;;  %s798_s27 = sadd.s32 %s8065_s15, %s8274_s16  ;;  %s9196_s28 = smov (!%p833_p13, %s830_s28), 17  ;;  %v8585_v18 = vld [vmem:[%s9158_s10 + $0x8] sm:$0xf] }
  0x22   : > { %7586 = vmatmul.mubr.msk.f32.vlgmr.msra.gmra.mrb[0].mxu1 %vm935_vm2, %v8347_v22  ;;  %v8363_v25 = vsel %vm929_vm1, %v1271_v19, %v1273_v23  ;;  %s7099_s20 = sshll.u32 %s798_s27, 3  ;;  %s811_s29 = sadd.s32 %s8066_s21, %s8274_s16 }
  0x23   : > { %7589 = vmatpush3.msk.msra.mxu1 %vm940_vm0, %v8263_v1  ;;  %7590 = vmatprep.mubr.msk.f32.mxu1 %vm935_vm2, %v8321_v10  ;;  %s800_s22 = scalar_lea.vmem %s9151_s3, %s7099_s20  ;;  %s7101_s26 = sshll.u32 %s811_s29, 3 }
  0x24   : > { %7603 = vmatprep.subr.msk.mxu1 %vm940_vm0, %v8250_v0  ;;  %v8389_v26 = vld [vmem:[%s800_s22] sm:$0xff]  ;;  %v8391_v27 = vld [vmem:[%s800_s22 + $0x8] sm:$0xff]  ;;  %v8395_v28 = vld [vmem:[%s800_s22 + $0x10] sm:$0x3]  ;;  %s813_s21 = scalar_lea.vmem %s9152_s4, %s7101_s26  ;;  %s9194_s17 = smov (!%p8367_p12, %s817_s17), 17 }
  0x25   : > { %7581 = vmatmul.mubr.msk.f32.vlgmr.msra.gmra.mrb[0].mxu0 %vm935_vm2, %v8290_v3  ;;  %v1436_v29 = vrot.slane %v8389_v26, 1  ;;  %v1437_v30 = vrot.slane %v8391_v27, 1  ;;  %v1439_v31 = vrot.slane %v8395_v28, 1  ;;  %v8407_v32 = vld [vmem:[%s813_s21] sm:$0xff]  ;;  %v8409_v33 = vld [vmem:[%s813_s21 + $0x8] sm:$0xff]  ;;  %s8067_s27 = smul.u32 3, %s9194_s17 }
  0x26   : > { %7594 = vmatpush3.msk.msra.mxu0 %vm940_vm0, %v8250_v0  ;;  %7595 = vmatprep.mubr.msk.f32.mxu0 %vm935_vm2, %v8355_v24  ;;  %v8415_v34 = vld [vmem:[%s813_s21 + $0x10] sm:$0x3]  ;;  %v1602_v36 = vrot.slane %v8407_v32, 1  ;;  %v1603_v37 = vrot.slane %v8409_v33, 1  ;;  %s843_s20 = sadd.s32 7, %s8252_s30  ;;  %s8068_s19 = smul.u32 3, %s9196_s28 }
  0x27   : > { %7598 = vmatprep.subr.msk.mxu0 %vm940_vm0, %v8263_v1  ;;  %v8418_v35 = vsel %vm929_vm1, %v1436_v29, %v1437_v30  ;;  %v1605_v38 = vrot.slane %v8415_v34, 1  ;;  %p8426_p0 = scmp.lt.s32.totalorder %s843_s20, 17  ;;  %v8435_v39 = vsel %vm929_vm1, %v1437_v30, %v1439_v31  ;;  %s824_s17 = sadd.s32 %s8067_s27, %s8274_s16 }
  0x28   : > { %s856_s13 = sadd.s32 8, %s8252_s30  ;;  %s7103_s28 = sshll.u32 %s824_s17, 3  ;;  %v8445_v40 = vsel %vm929_vm1, %v1602_v36, %v1603_v37 }
  0x29   : > { %7596 = vmatmul.mubr.msk.f32.vlgmr.msra.gmra.mrb[2].mxu0 %vm935_vm2, %v8363_v25  ;;  %s837_s14 = sadd.s32 %s8068_s19, %s8274_s16  ;;  %s826_s18 = scalar_lea.vmem %s9153_s5, %s7103_s28  ;;  %v8455_v41 = vsel %vm929_vm1, %v1603_v37, %v1605_v38  ;;  %v2266_v37 = vrot.slane %v8288_v2, 2  ;;  %v2267_v38 = vrot.slane %v8290_v3, 2 }
  0x2a   : > { %7599 = vmatpush3.msk.msra.mxu0 %vm940_vm0, %v8263_v1  ;;  %7600 = vmatprep.mubr.msk.f32.mxu0 %vm935_vm2, %v8333_v16  ;;  %s7105_s15 = sshll.u32 %s837_s14, 3  ;;  %v8457_v42 = vld [vmem:[%s826_s18] sm:$0xff]  ;;  %v8459_v43 = vld [vmem:[%s826_s18 + $0x8] sm:$0xff]  ;;  %p8466_p1 = scmp.lt.s32.totalorder %s856_s13, 17  ;;  %v8482_v46 = vld [vmem:[%s826_s18 + $0x10] sm:$0x3] }
  0x2b   : > { %7613 = vmatprep.subr.msk.mxu0 %vm940_vm0, %v8250_v0  ;;  %7591 = vmatmul.mubr.msk.f32.vlgmr.msra.gmra.mrb[0].mxu1 %vm935_vm2, %v8323_v11  ;;  %s839_s19 = scalar_lea.vmem %s9154_s6, %s7105_s15  ;;  %s9198_s20 = smov (!%p8426_p0, %s843_s20), 17  ;;  %v1768_v44 = vrot.slane %v8457_v42, 1  ;;  %v1769_v45 = vrot.slane %v8459_v43, 1  ;;  %v1771_v49 = vrot.slane %v8482_v46, 1 }
  0x2c   : > { %7604 = vmatpush3.msk.msra.mxu1 %vm940_vm0, %v8250_v0  ;;  %7605 = vmatprep.mubr.msk.f32.mxu1 %vm935_vm2, %v8418_v35  ;;  %s8069_s29 = smul.u32 3, %s9198_s20  ;;  %s869_s28 = sadd.s32 9, %s8252_s30  ;;  %v8493_v47 = vld [vmem:[%s839_s19] sm:$0xff]  ;;  %v8495_v48 = vld [vmem:[%s839_s19 + $0x8] sm:$0xff]  ;;  %v8504_v50 = vld [vmem:[%s839_s19 + $0x10] sm:$0x3] }
  0x2d   : > { %7608 = vmatprep.subr.msk.mxu1 %vm940_vm0, %v8263_v1  ;;  %s9200_s13 = smov (!%p8466_p1, %s856_s13), 17  ;;  %v8508_v51 = vsel %vm929_vm1, %v1768_v44, %v1769_v45  ;;  %v1934_v52 = vrot.slane %v8493_v47, 1  ;;  %v1935_v53 = vrot.slane %v8495_v48, 1  ;;  %p8519_p2 = scmp.lt.s32.totalorder %s869_s28, 17  ;;  %v1937_v54 = vrot.slane %v8504_v50, 1 }
  0x2e   : > { %s850_s20 = sadd.s32 %s8069_s29, %s8274_s16  ;;  %s8070_s22 = smul.u32 3, %s9200_s13  ;;  %v8532_v55 = vsel %vm929_vm1, %v1769_v45, %v1771_v49 }
  0x2f   : > { %7606 = vmatmul.mubr.msk.f32.vlgmr.msra.gmra.mrb[2].mxu1 %vm935_vm2, %v8435_v39  ;;  %s7107_s14 = sshll.u32 %s850_s20, 3  ;;  %v8545_v57 = vsel %vm929_vm1, %v1934_v52, %v1935_v53  ;;  %s9202_s28 = smov (!%p8519_p2, %s869_s28), 17  ;;  %v8561_v61 = vsel %vm929_vm1, %v1935_v53, %v1937_v54 }
  0x30   : > { %7609 = vmatpush3.msk.msra.mxu1 %vm940_vm0, %v8263_v1  ;;  %7610 = vmatprep.mubr.msk.f32.mxu1 %vm935_vm2, %v8389_v26  ;;  %s8515_s15 = scalar_lea.vmem %s9155_s7, %s7107_s14  ;;  %s863_s13 = sadd.s32 %s8070_s22, %s8274_s16 }
  0x31   : > { %7601 = vmatmul.mubr.msk.f32.vlgmr.msra.gmra.mrb[2].mxu0 %vm935_vm2, %v8335_v17  ;;  %7623 = vmatprep.subr.msk.mxu1 %vm940_vm0, %v8250_v0  ;;  %s7109_s27 = sshll.u32 %s863_s13, 3  ;;  %v8537_v56 = vld [vmem:[%s8515_s15] sm:$0xff]  ;;  %v8548_v58 = vld [vmem:[%s8515_s15 + $0x8] sm:$0xff]  ;;  %s8071_s30 = smul.u32 3, %s9202_s28  ;;  %v8580_v15 = vld [vmem:[%s8515_s15 + $0x10] sm:$0x3] }
  0x32   : > { %7614 = vmatpush3.msk.msra.mxu0 %vm940_vm0, %v8250_v0  ;;  %7615 = vmatprep.mubr.msk.f32.mxu0 %vm935_vm2, %v8445_v40  ;;  %s865_s29 = scalar_lea.vmem %s9156_s8, %s7109_s27  ;;  %v2100_v13 = vrot.slane %v8537_v56, 1  ;;  %v2101_v14 = vrot.slane %v8548_v58, 1  ;;  %v2103_v31 = vrot.slane %v8580_v15, 1  ;;  %s7115_s26 = sshll.u32 %s8286_s24, 3 }
  0x33   : > { %7618 = vmatprep.subr.msk.mxu0 %vm940_vm0, %v8263_v1  ;;  %v8550_v59 = vld [vmem:[%s865_s29] sm:$0xff]  ;;  %v918_v60 = vld [vmem:[%s865_s29 + $0x10] sm:$0x3]  ;;  %v8564_v5 = vld [vmem:[%s865_s29 + $0x8] sm:$0xff]  ;;  %s876_s28 = sadd.s32 %s8071_s30, %s8274_s16  ;;  %s9099_s13 = scalar_lea.vmem %s9160_s12, %s7115_s26 }
  0x34   : > { %v4129_v62 = vrot.slane %v8550_v59, 1  ;;  %v4132_v63 = vrot.slane %v918_v60, 1  ;;  %v4759_v6 = vrot.slane %v8550_v59, 2  ;;  %v4762_v7 = vrot.slane %v918_v60, 2  ;;  %s7111_s22 = sshll.u32 %s876_s28, 3 }
  0x35   : > { %7616 = vmatmul.mubr.msk.f32.vlgmr.msra.gmra.mrb[4].mxu0 %vm935_vm2, %v8455_v41  ;;  %v4130_v8 = vrot.slane %v8564_v5, 1  ;;  %v4760_v9 = vrot.slane %v8564_v5, 2  ;;  %s878_s15 = scalar_lea.vmem %s9157_s9, %s7111_s22  ;;  %v8615_v36 = vsel %vm929_vm1, %v2100_v13, %v2101_v14  ;;  %v2268_v13 = vsel %vm2265_vm3, %v2266_v37, %v2267_v38 }
  0x36   : > { %7619 = vmatpush3.msk.msra.mxu0 %vm940_vm0, %v8263_v1  ;;  %7620 = vmatprep.mubr.msk.f32.mxu0 %vm935_vm2, %v8407_v32  ;;  %v8619_v44 = vld [vmem:[%s878_s15] sm:$0xff]  ;;  %v921_v45 = vld [vmem:[%s878_s15 + $0x10] sm:$0x3]  ;;  %v8623_v60 = vld [vmem:[%s878_s15 + $0x8] sm:$0xff]  ;;  %v2355_v37 = vrot.slane %v8321_v10, 2 }
  0x37   : > { %7633 = vmatprep.subr.msk.mxu0 %vm940_vm0, %v8250_v0  ;;  %7611 = vmatmul.mubr.msk.f32.vlgmr.msra.gmra.mrb[2].mxu1 %vm935_vm2, %v8391_v27  ;;  %v8592_v19 = vsel %vm929_vm1, %v4129_v62, %v4130_v8  ;;  %v8595_v23 = vsel %vm929_vm1, %v4130_v8, %v4132_v63  ;;  %v8598_v29 = vsel %vm2265_vm3, %v4759_v6, %v4760_v9  ;;  %v6017_v49 = vrot.slane %v8619_v44, 1 }
  0x38   : > { %7624 = vmatpush3.msk.msra.mxu1 %vm940_vm0, %v8250_v0  ;;  %7625 = vmatprep.mubr.msk.f32.mxu1 %vm935_vm2, %v8508_v51  ;;  %v8606_v30 = vsel %vm2265_vm3, %v4760_v9, %v4762_v7  ;;  %v6020_v52 = vrot.slane %v921_v45, 1  ;;  %v6647_v53 = vrot.slane %v8619_v44, 2  ;;  %v6650_v54 = vrot.slane %v921_v45, 2 }
  0x39   : > { %7628 = vmatprep.subr.msk.mxu1 %vm940_vm0, %v8263_v1  ;;  %v2269_v62 = vrot.slane %v8292_v4, 2  ;;  %v6018_v2 = vrot.slane %v8623_v60, 1  ;;  %v6648_v3 = vrot.slane %v8623_v60, 2  ;;  %v8635_v63 = vsel %vm929_vm1, %v2101_v14, %v2103_v31 }
  0x3a   : > { %v2441_v6 = vrot.slane %v8333_v16, 2  ;;  %v2442_v4 = vrot.slane %v8335_v17, 2  ;;  %v2444_v31 = vrot.slane %v8339_v20, 2  ;;  %v2614_v20 = vrot.slane %v8409_v33, 2 }
  0x3b   : > { %7626 = vmatmul.mubr.msk.f32.vlgmr.msra.gmra.mrb[4].mxu1 %vm935_vm2, %v8532_v55  ;;  %v8642_v7 = vsel %vm929_vm1, %v6017_v49, %v6018_v2  ;;  %v8645_v8 = vsel %vm929_vm1, %v6018_v2, %v6020_v52  ;;  %v8651_v9 = vsel %vm2265_vm3, %v6648_v3, %v6650_v54  ;;  %v2270_v14 = vsel %vm2265_vm3, %v2267_v38, %v2269_v62 }
  0x3c   : > { %7629 = vmatpush3.msk.msra.mxu1 %vm940_vm0, %v8263_v1  ;;  %7630 = vmatprep.mubr.msk.f32.mxu1 %vm935_vm2, %v8457_v42  ;;  %v8667_v45 = vsel %vm2265_vm3, %v2441_v6, %v2442_v4  ;;  %v2356_v38 = vrot.slane %v8323_v11, 2  ;;  %v8684_v49 = vsel %vm2265_vm3, %v2442_v4, %v2444_v31  ;;  %v2616_v52 = vrot.slane %v8415_v34, 2 }
  0x3d   : > { %7621 = vmatmul.mubr.msk.f32.vlgmr.msra.gmra.mrb[4].mxu0 %vm935_vm2, %v8409_v33  ;;  %7643 = vmatprep.subr.msk.mxu1 %vm940_vm0, %v8250_v0  ;;  %v2527_v62 = vrot.slane %v8389_v26, 2  ;;  %v2528_v2 = vrot.slane %v8391_v27, 2  ;;  %v2785_v34 = vrot.slane %v8493_v47, 2  ;;  %v2788_v4 = vrot.slane %v8504_v50, 2 }
  0x3e   : > { %7634 = vmatpush3.msk.msra.mxu0 %vm940_vm0, %v8250_v0  ;;  %7635 = vmatprep.mubr.msk.f32.mxu0 %vm935_vm2, %v8545_v57  ;;  %v8691_v54 = vsel %vm2265_vm3, %v2355_v37, %v2356_v38  ;;  %v8707_v6 = vsel %vm2265_vm3, %v2614_v20, %v2616_v52  ;;  %v2699_v50 = vrot.slane %v8457_v42, 2  ;;  %v2700_v37 = vrot.slane %v8459_v43, 2 }
  0x3f   : > { %7638 = vmatprep.subr.msk.mxu0 %vm940_vm0, %v8263_v1  ;;  %v8721_v31 = vsel %vm2265_vm3, %v2527_v62, %v2528_v2  ;;  %v2702_v52 = vrot.slane %v8482_v46, 2  ;;  %v2871_v62 = vrot.slane %v8537_v56, 2 }
  0x41   : > { %7636 = vmatmul.mubr.msk.f32.vlgmr.msra.gmra.mrb[6].mxu0 %vm935_vm2, %v8561_v61  ;;  %v8772_v46 = vsel %vm2265_vm3, %v2700_v37, %v2702_v52 }
  0x42   : > { %7639 = vmatpush3.msk.msra.mxu0 %vm940_vm0, %v8263_v1  ;;  %7640 = vmatprep.mubr.msk.f32.mxu0 %vm935_vm2, %v8493_v47 }
  0x43   : > { %7653 = vmatprep.subr.msk.mxu0 %vm940_vm0, %v8585_v18  ;;  %7631 = vmatmul.mubr.msk.f32.vlgmr.msra.gmra.mrb[4].mxu1 %vm935_vm2, %v8459_v43 }
  0x44   : > { %7644 = vmatpush3.msk.msra.mxu1 %vm940_vm0, %v8250_v0  ;;  %7645 = vmatprep.mubr.msk.f32.mxu1 %vm935_vm2, %v8615_v36  ;;  %v8648_v0 = vsel %vm2265_vm3, %v6647_v53, %v6648_v3  ;;  %v2358_v53 = vrot.slane %v8325_v12, 2  ;;  %v2786_v12 = vrot.slane %v8495_v48, 2 }
  0x45   : > { %7648 = vmatprep.subr.msk.mxu1 %vm940_vm0, %v8263_v1 }
  0x47   : > { %7646 = vmatmul.mubr.msk.f32.vlgmr.msra.gmra.mrb[6].mxu1 %vm935_vm2, %v8635_v63 }
  0x48   : > { %7649 = vmatpush3.msk.msra.mxu1 %vm940_vm0, %v8263_v1  ;;  %7650 = vmatprep.mubr.msk.f32.mxu1 %vm935_vm2, %v8537_v56  ;;  %v2613_v1 = vrot.slane %v8407_v32, 2 }
  0x49   : > { %7641 = vmatmul.mubr.msk.f32.vlgmr.msra.gmra.mrb[6].mxu0 %vm935_vm2, %v8495_v48  ;;  %7658 = vmatprep.subr.msk.mxu1 %vm940_vm0, %v8585_v18 }
  0x4a   : > { %7654 = vmatpush3.msk.msra.mxu0 %vm940_vm0, %v8585_v18  ;;  %7655 = vmatprep.mubr.msk.f32.mxu0 %vm935_vm2, %v2268_v13  ;;  %v8698_v3 = vsel %vm2265_vm3, %v2613_v1, %v2614_v20  ;;  %v8715_v13 = vsel %vm2265_vm3, %v2356_v38, %v2358_v53  ;;  %v8739_v38 = vsel %vm2265_vm3, %v2786_v12, %v2788_v4  ;;  %v7190_v1 = vld [vmem:[%s9158_s10 + $0xc] sm:$0xf] }
  0x4b   : > { %7663 = vmatprep.subr.msk.mxu0 %vm940_vm0, %v8585_v18  ;;  %v8755_v53 = vsel %vm2265_vm3, %v2699_v50, %v2700_v37 }
  0x4d   : > { %7656 = vmatmul.mubr.msk.f32.vlgmr.msra.gmra.mrb[0].mxu0 %vm935_vm2, %v2270_v14  ;;  %v2530_v14 = vrot.slane %v8395_v28, 2  ;;  %v8732_v28 = vsel %vm2265_vm3, %v2785_v34, %v2786_v12  ;;  %v2872_v34 = vrot.slane %v8548_v58, 2 }
  0x4e   : > { %7664 = vmatpush3.msk.msra.mxu0 %vm940_vm0, %v8585_v18  ;;  %7665 = vmatprep.mubr.msk.f32.mxu0 %vm935_vm2, %v8667_v45 }
  0x4f   : > { %7673 = vmatprep.subr.msk.mxu0 %vm940_vm0, %v8585_v18  ;;  %7651 = vmatmul.mubr.msk.f32.vlgmr.msra.gmra.mrb[6].mxu1 %vm935_vm2, %v8548_v58  ;;  %v8749_v20 = vsel %vm2265_vm3, %v2528_v2, %v2530_v14  ;;  %v2874_v2 = vrot.slane %v8580_v15, 2  ;;  %v8778_v12 = vsel %vm2265_vm3, %v2871_v62, %v2872_v34 }
  0x50   : > { %7659 = vmatpush3.msk.msra.mxu1 %vm940_vm0, %v8585_v18  ;;  %7660 = vmatprep.mubr.msk.f32.mxu1 %vm935_vm2, %v8691_v54 }
  0x51   : > { %7666 = vmatmul.mubr.msk.f32.vlgmr.msra.gmra.mrb[2].mxu0 %vm935_vm2, %v8684_v49  ;;  %7668 = vmatprep.subr.msk.mxu1 %vm940_vm0, %v8585_v18  ;;  %v8793_v15 = vsel %vm2265_vm3, %v2872_v34, %v2874_v2 }
  0x52   : > { %7674 = vmatpush3.msk.msra.mxu0 %vm940_vm0, %v8585_v18  ;;  %7675 = vmatprep.mubr.msk.f32.mxu0 %vm935_vm2, %v8698_v3 }
  0x53   : > { %7683 = vmatprep.subr.msk.mxu0 %vm940_vm0, %v8585_v18  ;;  %7661 = vmatmul.mubr.msk.f32.vlgmr.msra.gmra.mrb[0].mxu1 %vm935_vm2, %v8715_v13 }
  0x54   : > { %7669 = vmatpush3.msk.msra.mxu1 %vm940_vm0, %v8585_v18  ;;  %7670 = vmatprep.mubr.msk.f32.mxu1 %vm935_vm2, %v8721_v31 }
  0x55   : > { %7676 = vmatmul.mubr.msk.f32.vlgmr.msra.gmra.mrb[4].mxu0 %vm935_vm2, %v8707_v6  ;;  %7678 = vmatprep.subr.msk.mxu1 %vm940_vm0, %v8585_v18 }
  0x56   : > { %7684 = vmatpush3.msk.msra.mxu0 %vm940_vm0, %v8585_v18  ;;  %7685 = vmatprep.mubr.msk.f32.mxu0 %vm935_vm2, %v8732_v28 }
  0x57   : > { %7693 = vmatprep.subr.msk.mxu0 %vm940_vm0, %v7190_v1  ;;  %7671 = vmatmul.mubr.msk.f32.vlgmr.msra.gmra.mrb[2].mxu1 %vm935_vm2, %v8749_v20 }
  0x58   : > { %7679 = vmatpush3.msk.msra.mxu1 %vm940_vm0, %v8585_v18  ;;  %7680 = vmatprep.mubr.msk.f32.mxu1 %vm935_vm2, %v8755_v53 }
  0x59   : > { %7686 = vmatmul.mubr.msk.f32.vlgmr.msra.gmra.mrb[6].mxu0 %vm935_vm2, %v8739_v38  ;;  %7688 = vmatprep.subr.msk.mxu1 %vm940_vm0, %v8585_v18 }
  0x5a   : > { %7694 = vmatpush3.msk.msra.mxu0 %vm940_vm0, %v7190_v1  ;;  %7695 = vmatprep.mubr.msk.f32.mxu0 %vm935_vm2, %v8321_v10  ;;  %v7215_v10 = vld [vmem:[%s9158_s10 + $0x10] sm:$0xf] }
  0x5b   : > { %7703 = vmatprep.subr.msk.mxu0 %vm940_vm0, %v7190_v1  ;;  %7681 = vmatmul.mubr.msk.f32.vlgmr.msra.gmra.mrb[4].mxu1 %vm935_vm2, %v8772_v46 }
  0x5c   : > { %7689 = vmatpush3.msk.msra.mxu1 %vm940_vm0, %v8585_v18  ;;  %7690 = vmatprep.mubr.msk.f32.mxu1 %vm935_vm2, %v8778_v12 }
  0x5d   : > { %7696 = vmatmul.mubr.msk.f32.vlgmr.msra.gmra.mrb[0].mxu0 %vm935_vm2, %v8323_v11  ;;  %7698 = vmatprep.subr.msk.mxu1 %vm940_vm0, %v7190_v1  ;;  %v7240_v11 = vld [vmem:[%s9158_s10 + $0x14] sm:$0xf] }
  0x5e   : > { %7704 = vmatpush3.msk.msra.mxu0 %vm940_vm0, %v7190_v1  ;;  %7705 = vmatprep.mubr.msk.f32.mxu0 %vm935_vm2, %v8389_v26 }
  0x5f   : > { %7713 = vmatprep.subr.msk.mxu0 %vm940_vm0, %v7190_v1  ;;  %7691 = vmatmul.mubr.msk.f32.vlgmr.msra.gmra.mrb[6].mxu1 %vm935_vm2, %v8793_v15 }
  0x60   : > { %7699 = vmatpush3.msk.msra.mxu1 %vm940_vm0, %v7190_v1  ;;  %7700 = vmatprep.mubr.msk.f32.mxu1 %vm935_vm2, %v8333_v16 }
  0x61   : > { %7706 = vmatmul.mubr.msk.f32.vlgmr.msra.gmra.mrb[2].mxu0 %vm935_vm2, %v8391_v27  ;;  %7708 = vmatprep.subr.msk.mxu1 %vm940_vm0, %v7190_v1 }
  0x62   : > { %7714 = vmatpush3.msk.msra.mxu0 %vm940_vm0, %v7190_v1  ;;  %7715 = vmatprep.mubr.msk.f32.mxu0 %vm935_vm2, %v8457_v42 }
  0x63   : > { %7723 = vmatprep.subr.msk.mxu0 %vm940_vm0, %v7190_v1  ;;  %7701 = vmatmul.mubr.msk.f32.vlgmr.msra.gmra.mrb[0].mxu1 %vm935_vm2, %v8335_v17 }
  0x64   : > { %7709 = vmatpush3.msk.msra.mxu1 %vm940_vm0, %v7190_v1  ;;  %7710 = vmatprep.mubr.msk.f32.mxu1 %vm935_vm2, %v8407_v32 }
  0x65   : > { %7716 = vmatmul.mubr.msk.f32.vlgmr.msra.gmra.mrb[4].mxu0 %vm935_vm2, %v8459_v43  ;;  %7718 = vmatprep.subr.msk.mxu1 %vm940_vm0, %v7190_v1 }
  0x66   : > { %7724 = vmatpush3.msk.msra.mxu0 %vm940_vm0, %v7190_v1  ;;  %7725 = vmatprep.mubr.msk.f32.mxu0 %vm935_vm2, %v8537_v56 }
  0x67   : > { %7733 = vmatprep.subr.msk.mxu0 %vm940_vm0, %v7215_v10  ;;  %7711 = vmatmul.mubr.msk.f32.vlgmr.msra.gmra.mrb[2].mxu1 %vm935_vm2, %v8409_v33 }
  0x68   : > { %7719 = vmatpush3.msk.msra.mxu1 %vm940_vm0, %v7190_v1  ;;  %7720 = vmatprep.mubr.msk.f32.mxu1 %vm935_vm2, %v8493_v47 }
  0x69   : > { %7726 = vmatmul.mubr.msk.f32.vlgmr.msra.gmra.mrb[6].mxu0 %vm935_vm2, %v8548_v58  ;;  %7728 = vmatprep.subr.msk.mxu1 %vm940_vm0, %v7190_v1 }
  0x6a   : > { %7734 = vmatpush3.msk.msra.mxu0 %vm940_vm0, %v7215_v10  ;;  %7735 = vmatprep.mubr.msk.f32.mxu0 %vm935_vm2, %v8344_v21  ;;  %v7265_v21 = vld [vmem:[%s9158_s10 + $0x18] sm:$0xf] }
  0x6b   : > { %7743 = vmatprep.subr.msk.mxu0 %vm940_vm0, %v7215_v10  ;;  %7721 = vmatmul.mubr.msk.f32.vlgmr.msra.gmra.mrb[4].mxu1 %vm935_vm2, %v8495_v48 }
  0x6c   : > { %7729 = vmatpush3.msk.msra.mxu1 %vm940_vm0, %v7190_v1  ;;  %7730 = vmatprep.mubr.msk.f32.mxu1 %vm935_vm2, %v8550_v59 }
  0x6d   : > { %7736 = vmatmul.mubr.msk.f32.vlgmr.msra.gmra.mrb[0].mxu0 %vm935_vm2, %v8347_v22  ;;  %7738 = vmatprep.subr.msk.mxu1 %vm940_vm0, %v7215_v10  ;;  %v7340_v22 = vld [vmem:[%s9159_s11] ss:$0 sm:$0xff] }
  0x6e   : > { %7744 = vmatpush3.msk.msra.mxu0 %vm940_vm0, %v7215_v10  ;;  %7745 = vmatprep.mubr.msk.f32.mxu0 %vm935_vm2, %v8418_v35 }
  0x6f   : > { %7753 = vmatprep.subr.msk.mxu0 %vm940_vm0, %v7215_v10  ;;  %7731 = vmatmul.mubr.msk.f32.vlgmr.msra.gmra.mrb[6].mxu1 %vm935_vm2, %v8564_v5 }
  0x70   : > { %7739 = vmatpush3.msk.msra.mxu1 %vm940_vm0, %v7215_v10  ;;  %7740 = vmatprep.mubr.msk.f32.mxu1 %vm935_vm2, %v8355_v24 }
  0x71   : > { %7746 = vmatmul.mubr.msk.f32.vlgmr.msra.gmra.mrb[2].mxu0 %vm935_vm2, %v8435_v39  ;;  %7748 = vmatprep.subr.msk.mxu1 %vm940_vm0, %v7215_v10 }
  0x72   : > { %7754 = vmatpush3.msk.msra.mxu0 %vm940_vm0, %v7215_v10  ;;  %7755 = vmatprep.mubr.msk.f32.mxu0 %vm935_vm2, %v8508_v51 }
  0x73   : > { %7763 = vmatprep.subr.msk.mxu0 %vm940_vm0, %v7215_v10  ;;  %7741 = vmatmul.mubr.msk.f32.vlgmr.msra.gmra.mrb[0].mxu1 %vm935_vm2, %v8363_v25 }
  0x74   : > { %7749 = vmatpush3.msk.msra.mxu1 %vm940_vm0, %v7215_v10  ;;  %7750 = vmatprep.mubr.msk.f32.mxu1 %vm935_vm2, %v8445_v40 }
  0x75   : > { %7756 = vmatmul.mubr.msk.f32.vlgmr.msra.gmra.mrb[4].mxu0 %vm935_vm2, %v8532_v55  ;;  %7758 = vmatprep.subr.msk.mxu1 %vm940_vm0, %v7215_v10 }
  0x76   : > { %7764 = vmatpush3.msk.msra.mxu0 %vm940_vm0, %v7215_v10  ;;  %7765 = vmatprep.mubr.msk.f32.mxu0 %vm935_vm2, %v8615_v36 }
  0x77   : > { %7773 = vmatprep.subr.msk.mxu0 %vm940_vm0, %v7240_v11  ;;  %7751 = vmatmul.mubr.msk.f32.vlgmr.msra.gmra.mrb[2].mxu1 %vm935_vm2, %v8455_v41 }
  0x78   : > { %7759 = vmatpush3.msk.msra.mxu1 %vm940_vm0, %v7215_v10  ;;  %7760 = vmatprep.mubr.msk.f32.mxu1 %vm935_vm2, %v8545_v57 }
  0x79   : > { %7766 = vmatmul.mubr.msk.f32.vlgmr.msra.gmra.mrb[6].mxu0 %vm935_vm2, %v8635_v63  ;;  %7768 = vmatprep.subr.msk.mxu1 %vm940_vm0, %v7215_v10 }
  0x7a   : > { %7774 = vmatpush3.msk.msra.mxu0 %vm940_vm0, %v7240_v11  ;;  %7775 = vmatprep.mubr.msk.f32.mxu0 %vm935_vm2, %v8691_v54 }
  0x7b   : > { %7783 = vmatprep.subr.msk.mxu0 %vm940_vm0, %v7240_v11  ;;  %7761 = vmatmul.mubr.msk.f32.vlgmr.msra.gmra.mrb[4].mxu1 %vm935_vm2, %v8561_v61 }
  0x7c   : > { %7769 = vmatpush3.msk.msra.mxu1 %vm940_vm0, %v7215_v10  ;;  %7770 = vmatprep.mubr.msk.f32.mxu1 %vm935_vm2, %v8592_v19 }
  0x7d   : > { %7776 = vmatmul.mubr.msk.f32.vlgmr.msra.gmra.mrb[0].mxu0 %vm935_vm2, %v8715_v13  ;;  %7778 = vmatprep.subr.msk.mxu1 %vm940_vm0, %v7240_v11 }
  0x7e   : > { %7784 = vmatpush3.msk.msra.mxu0 %vm940_vm0, %v7240_v11  ;;  %7785 = vmatprep.mubr.msk.f32.mxu0 %vm935_vm2, %v8721_v31 }
  0x7f   : > { %7793 = vmatprep.subr.msk.mxu0 %vm940_vm0, %v7240_v11  ;;  %7771 = vmatmul.mubr.msk.f32.vlgmr.msra.gmra.mrb[6].mxu1 %vm935_vm2, %v8595_v23 }
  0x80   : > { %7779 = vmatpush3.msk.msra.mxu1 %vm940_vm0, %v7240_v11  ;;  %7780 = vmatprep.mubr.msk.f32.mxu1 %vm935_vm2, %v8667_v45 }
  0x81   : > { %7786 = vmatmul.mubr.msk.f32.vlgmr.msra.gmra.mrb[2].mxu0 %vm935_vm2, %v8749_v20  ;;  %7788 = vmatprep.subr.msk.mxu1 %vm940_vm0, %v7240_v11 }
  0x82   : > { %7794 = vmatpush3.msk.msra.mxu0 %vm940_vm0, %v7240_v11  ;;  %7795 = vmatprep.mubr.msk.f32.mxu0 %vm935_vm2, %v8755_v53 }
  0x83   : > { %7803 = vmatprep.subr.msk.mxu0 %vm940_vm0, %v7240_v11  ;;  %7781 = vmatmul.mubr.msk.f32.vlgmr.msra.gmra.mrb[0].mxu1 %vm935_vm2, %v8684_v49 }
  0x84   : > { %7789 = vmatpush3.msk.msra.mxu1 %vm940_vm0, %v7240_v11  ;;  %7790 = vmatprep.mubr.msk.f32.mxu1 %vm935_vm2, %v8698_v3 }
  0x85   : > { %7796 = vmatmul.mubr.msk.f32.vlgmr.msra.gmra.mrb[4].mxu0 %vm935_vm2, %v8772_v46  ;;  %7798 = vmatprep.subr.msk.mxu1 %vm940_vm0, %v7240_v11 }
  0x86   : > { %7804 = vmatpush3.msk.msra.mxu0 %vm940_vm0, %v7240_v11  ;;  %7805 = vmatprep.mubr.msk.f32.mxu0 %vm935_vm2, %v8778_v12 }
  0x87   : > { %7813 = vmatprep.subr.msk.mxu0 %vm940_vm0, %v7265_v21  ;;  %7791 = vmatmul.mubr.msk.f32.vlgmr.msra.gmra.mrb[2].mxu1 %vm935_vm2, %v8707_v6 }
  0x88   : > { %7799 = vmatpush3.msk.msra.mxu1 %vm940_vm0, %v7240_v11  ;;  %7800 = vmatprep.mubr.msk.f32.mxu1 %vm935_vm2, %v8732_v28 }
  0x89   : > { %7806 = vmatmul.mubr.msk.f32.vlgmr.msra.gmra.mrb[6].mxu0 %vm935_vm2, %v8793_v15  ;;  %7808 = vmatprep.subr.msk.mxu1 %vm940_vm0, %v7240_v11 }
  0x8a   : > { %7814 = vmatpush3.msk.msra.mxu0 %vm940_vm0, %v7265_v21  ;;  %7815 = vmatprep.mubr.msk.f32.mxu0 %vm935_vm2, %v8333_v16  ;;  %v7290_v16 = vld [vmem:[%s9158_s10 + $0x1c] sm:$0xf] }
  0x8b   : > { %7823 = vmatprep.subr.msk.mxu0 %vm940_vm0, %v7265_v21  ;;  %7801 = vmatmul.mubr.msk.f32.vlgmr.msra.gmra.mrb[4].mxu1 %vm935_vm2, %v8739_v38 }
  0x8c   : > { %7809 = vmatpush3.msk.msra.mxu1 %vm940_vm0, %v7240_v11  ;;  %7810 = vmatprep.mubr.msk.f32.mxu1 %vm935_vm2, %v8598_v29 }
  0x8d   : > { %7816 = vmatmul.mubr.msk.f32.vlgmr.msra.gmra.mrb[0].mxu0 %vm935_vm2, %v8335_v17  ;;  %7818 = vmatprep.subr.msk.mxu1 %vm940_vm0, %v7265_v21  ;;  %v7315_v17 = vld [vmem:[%s9158_s10 + $0x20] sm:$0xf] }
  0x8e   : > { %7824 = vmatpush3.msk.msra.mxu0 %vm940_vm0, %v7265_v21  ;;  %7825 = vmatprep.mubr.msk.f32.mxu0 %vm935_vm2, %v8407_v32 }
  0x8f   : > { %7833 = vmatprep.subr.msk.mxu0 %vm940_vm0, %v7265_v21  ;;  %7811 = vmatmul.mubr.msk.f32.vlgmr.msra.gmra.mrb[6].mxu1 %vm935_vm2, %v8606_v30 }
  0x90   : > { %7819 = vmatpush3.msk.msra.mxu1 %vm940_vm0, %v7265_v21  ;;  %7820 = vmatprep.mubr.msk.f32.mxu1 %vm935_vm2, %v8389_v26 }
  0x91   : > { %7826 = vmatmul.mubr.msk.f32.vlgmr.msra.gmra.mrb[2].mxu0 %vm935_vm2, %v8409_v33  ;;  %7828 = vmatprep.subr.msk.mxu1 %vm940_vm0, %v7265_v21 }
  0x92   : > { %7834 = vmatpush3.msk.msra.mxu0 %vm940_vm0, %v7265_v21  ;;  %7835 = vmatprep.mubr.msk.f32.mxu0 %vm935_vm2, %v8493_v47 }
  0x93   : > { %7843 = vmatprep.subr.msk.mxu0 %vm940_vm0, %v7265_v21  ;;  %7821 = vmatmul.mubr.msk.f32.vlgmr.msra.gmra.mrb[0].mxu1 %vm935_vm2, %v8391_v27 }
  0x94   : > { %7829 = vmatpush3.msk.msra.mxu1 %vm940_vm0, %v7265_v21  ;;  %7830 = vmatprep.mubr.msk.f32.mxu1 %vm935_vm2, %v8457_v42 }
  0x95   : > { %7836 = vmatmul.mubr.msk.f32.vlgmr.msra.gmra.mrb[4].mxu0 %vm935_vm2, %v8495_v48  ;;  %7838 = vmatprep.subr.msk.mxu1 %vm940_vm0, %v7265_v21 }
  0x96   : > { %7844 = vmatpush3.msk.msra.mxu0 %vm940_vm0, %v7265_v21  ;;  %7845 = vmatprep.mubr.msk.f32.mxu0 %vm935_vm2, %v8550_v59 }
  0x97   : > { %7853 = vmatprep.subr.msk.mxu0 %vm940_vm0, %v7290_v16  ;;  %7831 = vmatmul.mubr.msk.f32.vlgmr.msra.gmra.mrb[2].mxu1 %vm935_vm2, %v8459_v43 }
  0x98   : > { %7839 = vmatpush3.msk.msra.mxu1 %vm940_vm0, %v7265_v21  ;;  %7840 = vmatprep.mubr.msk.f32.mxu1 %vm935_vm2, %v8537_v56 }
  0x99   : > { %7846 = vmatmul.mubr.msk.f32.vlgmr.msra.gmra.mrb[6].mxu0 %vm935_vm2, %v8564_v5  ;;  %7848 = vmatprep.subr.msk.mxu1 %vm940_vm0, %v7265_v21 }
  0x9a   : > { %7854 = vmatpush3.msk.msra.mxu0 %vm940_vm0, %v7290_v16  ;;  %7855 = vmatprep.mubr.msk.f32.mxu0 %vm935_vm2, %v8355_v24 }
  0x9b   : > { %7863 = vmatprep.subr.msk.mxu0 %vm940_vm0, %v7290_v16  ;;  %7841 = vmatmul.mubr.msk.f32.vlgmr.msra.gmra.mrb[4].mxu1 %vm935_vm2, %v8548_v58 }
  0x9c   : > { %7849 = vmatpush3.msk.msra.mxu1 %vm940_vm0, %v7265_v21  ;;  %7850 = vmatprep.mubr.msk.f32.mxu1 %vm935_vm2, %v8619_v44 }
  0x9d   : > { %7856 = vmatmul.mubr.msk.f32.vlgmr.msra.gmra.mrb[0].mxu0 %vm935_vm2, %v8363_v25  ;;  %7858 = vmatprep.subr.msk.mxu1 %vm940_vm0, %v7290_v16 }
  0x9e   : > { %7864 = vmatpush3.msk.msra.mxu0 %vm940_vm0, %v7290_v16  ;;  %7865 = vmatprep.mubr.msk.f32.mxu0 %vm935_vm2, %v8445_v40 }
  0x9f   : > { %7873 = vmatprep.subr.msk.mxu0 %vm940_vm0, %v7290_v16  ;;  %7851 = vmatmul.mubr.msk.f32.vlgmr.msra.gmra.mrb[6].mxu1 %vm935_vm2, %v8623_v60 }
  0xa0   : > { %7859 = vmatpush3.msk.msra.mxu1 %vm940_vm0, %v7290_v16  ;;  %7860 = vmatprep.mubr.msk.f32.mxu1 %vm935_vm2, %v8418_v35 }
  0xa1   : > { %7866 = vmatmul.mubr.msk.f32.vlgmr.msra.gmra.mrb[2].mxu0 %vm935_vm2, %v8455_v41  ;;  %7868 = vmatprep.subr.msk.mxu1 %vm940_vm0, %v7290_v16 }
  0xa2   : > { %7874 = vmatpush3.msk.msra.mxu0 %vm940_vm0, %v7290_v16  ;;  %7875 = vmatprep.mubr.msk.f32.mxu0 %vm935_vm2, %v8545_v57 }
  0xa3   : > { %7883 = vmatprep.subr.msk.mxu0 %vm940_vm0, %v7290_v16  ;;  %7861 = vmatmul.mubr.msk.f32.vlgmr.msra.gmra.mrb[0].mxu1 %vm935_vm2, %v8435_v39 }
  0xa4   : > { %7869 = vmatpush3.msk.msra.mxu1 %vm940_vm0, %v7290_v16  ;;  %7870 = vmatprep.mubr.msk.f32.mxu1 %vm935_vm2, %v8508_v51 }
  0xa5   : > { %7876 = vmatmul.mubr.msk.f32.vlgmr.msra.gmra.mrb[4].mxu0 %vm935_vm2, %v8561_v61  ;;  %7878 = vmatprep.subr.msk.mxu1 %vm940_vm0, %v7290_v16 }
  0xa6   : > { %7884 = vmatpush3.msk.msra.mxu0 %vm940_vm0, %v7290_v16  ;;  %7885 = vmatprep.mubr.msk.f32.mxu0 %vm935_vm2, %v8592_v19 }
  0xa7   : > { %7893 = vmatprep.subr.msk.mxu0 %vm940_vm0, %v7315_v17  ;;  %7871 = vmatmul.mubr.msk.f32.vlgmr.msra.gmra.mrb[2].mxu1 %vm935_vm2, %v8532_v55 }
  0xa8   : > { %7879 = vmatpush3.msk.msra.mxu1 %vm940_vm0, %v7290_v16  ;;  %7880 = vmatprep.mubr.msk.f32.mxu1 %vm935_vm2, %v8615_v36 }
  0xa9   : > { %7886 = vmatmul.mubr.msk.f32.vlgmr.msra.gmra.mrb[6].mxu0 %vm935_vm2, %v8595_v23  ;;  %7888 = vmatprep.subr.msk.mxu1 %vm940_vm0, %v7290_v16 }
  0xaa   : > { %7894 = vmatpush3.msk.msra.mxu0 %vm940_vm0, %v7315_v17  ;;  %7895 = vmatprep.mubr.msk.f32.mxu0 %vm935_vm2, %v8667_v45 }
  0xab   : > { %7903 = vmatprep.subr.msk.mxu0 %vm940_vm0, %v7315_v17  ;;  %7881 = vmatmul.mubr.msk.f32.vlgmr.msra.gmra.mrb[4].mxu1 %vm935_vm2, %v8635_v63 }
  0xac   : > { %7889 = vmatpush3.msk.msra.mxu1 %vm940_vm0, %v7290_v16  ;;  %7890 = vmatprep.mubr.msk.f32.mxu1 %vm935_vm2, %v8642_v7 }
  0xad   : > { %7896 = vmatmul.mubr.msk.f32.vlgmr.msra.gmra.mrb[0].mxu0 %vm935_vm2, %v8684_v49  ;;  %7898 = vmatprep.subr.msk.mxu1 %vm940_vm0, %v7315_v17 }
  0xae   : > { %7904 = vmatpush3.msk.msra.mxu0 %vm940_vm0, %v7315_v17  ;;  %7905 = vmatprep.mubr.msk.f32.mxu0 %vm935_vm2, %v8698_v3 }
  0xaf   : > { %7913 = vmatprep.subr.msk.mxu0 %vm940_vm0, %v7315_v17  ;;  %7891 = vmatmul.mubr.msk.f32.vlgmr.msra.gmra.mrb[6].mxu1 %vm935_vm2, %v8645_v8 }
  0xb0   : > { %7899 = vmatpush3.msk.msra.mxu1 %vm940_vm0, %v7315_v17  ;;  %7900 = vmatprep.mubr.msk.f32.mxu1 %vm935_vm2, %v8721_v31 }
  0xb1   : > { %7906 = vmatmul.mubr.msk.f32.vlgmr.msra.gmra.mrb[2].mxu0 %vm935_vm2, %v8707_v6  ;;  %7908 = vmatprep.subr.msk.mxu1 %vm940_vm0, %v7315_v17 }
  0xb2   : > { %7914 = vmatpush3.msk.msra.mxu0 %vm940_vm0, %v7315_v17  ;;  %7915 = vmatprep.mubr.msk.f32.mxu0 %vm935_vm2, %v8732_v28 }
  0xb3   : > { %7923 = vmatprep.subr.msk.mxu0 %vm940_vm0, %v7315_v17  ;;  %7901 = vmatmul.mubr.msk.f32.vlgmr.msra.gmra.mrb[0].mxu1 %vm935_vm2, %v8749_v20 }
  0xb4   : > { %7909 = vmatpush3.msk.msra.mxu1 %vm940_vm0, %v7315_v17  ;;  %7910 = vmatprep.mubr.msk.f32.mxu1 %vm935_vm2, %v8755_v53 }
  0xb5   : > { %7916 = vmatmul.mubr.msk.f32.vlgmr.msra.gmra.mrb[4].mxu0 %vm935_vm2, %v8739_v38  ;;  %7918 = vmatprep.subr.msk.mxu1 %vm940_vm0, %v7315_v17 }
  0xb6   : > { %7924 = vmatpush3.msk.msra.mxu0 %vm940_vm0, %v7315_v17  ;;  %7925 = vmatprep.mubr.msk.f32.mxu0 %vm935_vm2, %v8598_v29 }
  0xb7   : > { %7911 = vmatmul.mubr.msk.f32.vlgmr.msra.gmra.mrb[2].mxu1 %vm935_vm2, %v8772_v46 }
  0xb8   : > { %7919 = vmatpush3.msk.msra.mxu1 %vm940_vm0, %v7315_v17  ;;  %7920 = vmatprep.mubr.msk.f32.mxu1 %vm935_vm2, %v8778_v12 }
  0xb9   : > { %7926 = vmatmul.mubr.msk.f32.vlgmr.msra.gmra.mrb[6].mxu0 %vm935_vm2, %v8606_v30  ;;  %7928 = vmatprep.subr.msk.mxu1 %vm940_vm0, %v7315_v17 }
  0xbb   : > { %7921 = vmatmul.mubr.msk.f32.vlgmr.msra.gmra.mrb[4].mxu1 %vm935_vm2, %v8793_v15 }
  0xbc   : > { %7929 = vmatpush3.msk.msra.mxu1 %vm940_vm0, %v7315_v17  ;;  %7930 = vmatprep.mubr.msk.f32.mxu1 %vm935_vm2, %v8648_v0 }
  0xbf   : > { %7931 = vmatmul.mubr.msk.f32.vlgmr.msra.gmra.mrb[6].mxu1 %vm935_vm2, %v8651_v9 }
 0x180   : > { %v7897_v24 = vpop.f32.mrb[0].mxu0 }
 0x181   : > { %v6740_v25 = vadd.f32 %v7897_v24, %v7340_v22  ;;  %v6174_v26 = vpop.f32.mrb[1].mxu0 }
 0x182   : > { %v6739_v27 = vadd.f32 %v7340_v22, %v6174_v26 }
 0x183   : > { %6743 = vst.msk [vmem:[%s9099_s13 + $0x8] sm:$0xff] %vm6741_vm4, %v6740_v25 }
 0x184   : > { %6742 = vst.msk [vmem:[%s9099_s13] sm:$0xff] %vm6741_vm4, %v6739_v27  ;;  %v7907_v32 = vpop.f32.mrb[2].mxu0 }
 0x185   : > { %v6750_v33 = vadd.f32 %v7907_v32, %v7340_v22  ;;  %v6328_v35 = vpop.f32.mrb[3].mxu0 }
 0x186   : > { %v6749_v39 = vadd.f32 %v7340_v22, %v6328_v35  ;;  %v7902_v41 = vpop.f32.mrb[0].mxu1 }
 0x187   : > { %7344 = vst.msk [vmem:[%s9099_s13 + $0x28] sm:$0xff] %vm6741_vm4, %v6750_v33  ;;  %v6745_v47 = vadd.f32 %v7902_v41, %v7340_v22  ;;  %v6251_v48 = vpop.f32.mrb[1].mxu1 }
 0x188   : > { %7343 = vst.msk [vmem:[%s9099_s13 + $0x20] sm:$0xff] %vm6741_vm4, %v6749_v39  ;;  %v7917_v40 = vpop.f32.mrb[4].mxu0  ;;  %v6744_v55 = vadd.f32 %v7340_v22, %v6251_v48 }
 0x189   : > { %v6760_v42 = vadd.f32 %v7917_v40, %v7340_v22  ;;  %v6482_v43 = vpop.f32.mrb[5].mxu0  ;;  %7342 = vst.msk [vmem:[%s9099_s13 + $0x18] sm:$0xff] %vm6741_vm4, %v6745_v47 }
 0x18a   : > { %v6759_v51 = vadd.f32 %v7340_v22, %v6482_v43  ;;  %7341 = vst.msk [vmem:[%s9099_s13 + $0x10] sm:$0xff] %vm6741_vm4, %v6744_v55  ;;  %v7912_v57 = vpop.f32.mrb[2].mxu1 }
 0x18b   : > { %7348 = vst.msk [vmem:[%s9099_s13 + $0x48] sm:$0xff] %vm6741_vm4, %v6760_v42  ;;  %v6755_v61 = vadd.f32 %v7912_v57, %v7340_v22  ;;  %v6405_v5 = vpop.f32.mrb[3].mxu1 }
 0x18c   : > { %7347 = vst.msk [vmem:[%s9099_s13 + $0x40] sm:$0xff] %vm6741_vm4, %v6759_v51  ;;  %v7927_v56 = vpop.f32.mrb[6].mxu0  ;;  %v6754_v19 = vadd.f32 %v7340_v22, %v6405_v5 }
 0x18d   : > { %v6770_v58 = vadd.f32 %v7927_v56, %v7340_v22  ;;  %v6636_v59 = vpop.f32.mrb[7].mxu0  ;;  %7346 = vst.msk [vmem:[%s9099_s13 + $0x38] sm:$0xff] %vm6741_vm4, %v6755_v61 }
 0x18e   : > { %v6769_v18 = vadd.f32 %v7340_v22, %v6636_v59  ;;  %7345 = vst.msk [vmem:[%s9099_s13 + $0x30] sm:$0xff] %vm6741_vm4, %v6754_v19  ;;  %v7922_v23 = vpop.f32.mrb[4].mxu1 }
 0x18f   : > { %7352 = vst.msk [vmem:[%s9099_s13 + $0x68] sm:$0xff] %vm6741_vm4, %v6770_v58  ;;  %v6765_v29 = vadd.f32 %v7922_v23, %v7340_v22  ;;  %v6559_v30 = vpop.f32.mrb[5].mxu1 }
 0x190   : > { %7351 = vst.msk [vmem:[%s9099_s13 + $0x60] sm:$0xff] %vm6741_vm4, %v6769_v18  ;;  %v6764_v36 = vadd.f32 %v7340_v22, %v6559_v30 }
 0x191   : > { %7350 = vst.msk [vmem:[%s9099_s13 + $0x58] sm:$0xff] %vm6741_vm4, %v6765_v29 }
 0x192   : > { %7349 = vst.msk [vmem:[%s9099_s13 + $0x50] sm:$0xff] %vm6741_vm4, %v6764_v36  ;;  %v7932_v44 = vpop.f32.mrb[6].mxu1 }
 0x193   : > { %v6775_v60 = vadd.f32 %v7932_v44, %v7340_v22  ;;  %v6722_v63 = vpop.f32.mrb[7].mxu1 }
 0x194   : > { %v6774_v7 = vadd.f32 %v7340_v22, %v6722_v63 }
 0x195   : > { %7354 = vst.msk [vmem:[%s9099_s13 + $0x78] sm:$0xff] %vm6741_vm4, %v6775_v60 }
 0x196   : > { %7353 = vst.msk [vmem:[%s9099_s13 + $0x70] sm:$0xff] %vm6741_vm4, %v6774_v7 }
 0x197 PF: > { %s22_s25 = sadd.s32 1, %s8150_s25   ;;  %s9171_s22 = sld [smem:[#allocation2_spill]] }
 0x198   : > { %p19_p3 = scmp.ge.s32.totalorder %s22_s25, 6   ;;  %s9172_s24 = sld [smem:[#allocation3_spill]] }
 0x199   : > { %s9173_s27 = sld [smem:[#allocation4_spill]]  ;;  %s9174_s21 = smov %s8142_s23 }
 0x19a   :  { %21 = sbr.rel (!%p19_p3) target bundleno = 3 (0x3), region = 140 }
 0x19e   : > { %s9175_s23 = smov %s9172_s24 }
 0x19f   : > { %s9176_s24 = smov %s9173_s27 }

</bundles_post_ra>
